<compile_context>
chip_gen: v7x
topology: tpu7x:2x2x1
jax: 0.10.0
libtpu: 0.0.40
codegen_flags: <defaults>
</compile_context>

<pallas_src>
import jax
import jax.numpy as jnp
from jax import lax
from jax.experimental import pallas as pl
from jax.experimental.pallas import tpu as pltpu


# ----------------------------------------------------------------------------
# Fused DownBlock forward
# ----------------------------------------------------------------------------
def down_block(x_nhwc, params1, params2, *, compute_dtype=jnp.float32,
               max_batch_block=8):
    """x_nhwc: (N, H, W, Cin) f32.

    params1 = (w1, b1, w2, b2, ws, bs)  -- resblock1 (Cin != Cout: 1x1 skip)
              w1: (3,3,Cin,Cout) HWIO, w2: (3,3,Cout,Cout), ws: (Cin,Cout)
    params2 = (w1, b1, w2, b2)          -- resblock2 (identity skip)
    returns (pooled (N,H/2,W/2,Cout), (skip1, skip2) each (N,H,W,Cout))
    """
    N, H, W, Cin = x_nhwc.shape
    assert H % 2 == 0 and W % 2 == 0, "MaxPool2d(2,2) needs even H and W"
    w1a, b1a, w2a, b2a, wsa, bsa = params1
    w1b, b1b, w2b, b2b = params2
    Cout = w1a.shape[-1]
    f32 = jnp.float32
    cdt = compute_dtype

    # batch block per grid step: largest divisor of N not exceeding 8
    Nb = 1
    for d in range(1, min(N, max_batch_block) + 1):
        if N % d == 0:
            Nb = d
    steps = N // Nb

    Hp, Wp = H // 2, W // 2
    WCi, WCo = W * Cin, W * Cout
    HP2 = H + 2                     # per-sample row extent incl. 1-px row halo
    R = Nb * HP2 - 2                # stacked conv-output rows (incl. junk rows)

    # ---------------- host-side weight restructuring (pure layout) ----------
    def banded(wt, cin):
        # wt (3,3,cin,Cout) [dy,dx,i,o] -> (3, W*cin, W*Cout), block-banded,
        # with the column halo folded in (out-of-range dx taps dropped):
        #   big[dy, r*cin + i, w*Cout + o] = wt[dy,dx,i,o]  where r = w+dx-1
        r = jnp.arange(W)[None, :, None]
        w = jnp.arange(W)[None, None, :]
        dx = jnp.arange(3)[:, None, None]
        ind = (r == w + dx - 1).astype(wt.dtype)                # (3, W, W)
        big = jnp.einsum('xrw,yxio->yriwo', ind, wt)
        return big.reshape(3, W * cin, W * Cout)

    def blockdiag(ws):
        # (Cin, Cout) -> (W*Cin, W*Cout) block-diagonal (per-pixel 1x1 conv)
        eye = jnp.eye(W, dtype=ws.dtype)
        return jnp.einsum('wv,io->wivo', eye, ws).reshape(W * Cin, W * Cout)

    def tiled_bias(b):
        return jnp.tile(b, W).reshape(1, W * Cout).astype(f32)

    w1a_b = banded(w1a, Cin).astype(cdt)
    w2a_b = banded(w2a, Cout).astype(cdt)
    w1b_b = banded(w1b, Cout).astype(cdt)
    w2b_b = banded(w2b, Cout).astype(cdt)
    wsa_b = blockdiag(wsa).astype(cdt)
    b1a_t, b2a_t, bsa_t = tiled_bias(b1a), tiled_bias(b2a), tiled_bias(bsa)
    b1b_t, b2b_t = tiled_bias(b1b), tiled_bias(b2b)

    # maxpool selectors, built for the stacked (per-sample row-haloed) layout.
    p = jnp.arange(Nb * Hp)
    p_s, p_q = p // Hp, p % Hp
    r_idx = jnp.arange(R)[None, :]
    rowsel_e = (r_idx == (p_s * HP2 + 2 * p_q)[:, None]).astype(f32)
    rowsel_o = (r_idx == (p_s * HP2 + 2 * p_q + 1)[:, None]).astype(f32)
    l = jnp.arange(WCo)
    m = jnp.arange(Wp * Cout)
    same_c = (l[:, None] % Cout) == (m[None, :] % Cout)
    colsel_e = (same_c & ((l[:, None] // Cout) == 2 * (m[None, :] // Cout))).astype(f32)
    colsel_o = (same_c & ((l[:, None] // Cout) == 2 * (m[None, :] // Cout) + 1)).astype(f32)

    # valid-row mask for the stacked layout (zeroes junk rows between samples)
    rr = jnp.arange(R)
    rowmask = ((rr % HP2) < H).astype(f32).reshape(R, 1)

    x_flat = x_nhwc.reshape(N, H, WCi)        # lane-dense (H, W*Cin) planes

    # ---------------- fused kernel: Nb batch elements per grid step ---------
    def kernel(x_ref,
               w1a_ref, b1a_ref, w2a_ref, b2a_ref, wsa_ref, bsa_ref,
               w1b_ref, b1b_ref, w2b_ref, b2b_ref,
               ce_ref, co_ref, re_ref, ro_ref, mask_ref,
               y1_ref, y2_ref, out_ref,
               x_pad, h_pad, g_pad):
        mask = mask_ref[...]                                   # (R, 1) f32

        # Zero only the halo rows (per step, so a "parallel" batch axis on
        # megacore parts is safe; the interior is fully overwritten below).
        zci = jnp.zeros((1, WCi), f32)
        zco = jnp.zeros((1, WCo), f32)
        for s in range(Nb):
            x_pad[s * HP2:s * HP2 + 1, :] = zci
            x_pad[s * HP2 + H + 1:s * HP2 + H + 2, :] = zci
        h_pad[0:1, :] = zco
        h_pad[Nb * HP2 - 1:Nb * HP2, :] = zco
        g_pad[0:1, :] = zco
        g_pad[Nb * HP2 - 1:Nb * HP2, :] = zco

        # scatter the Nb input planes into their row-haloed slots
        for s in range(Nb):
            x_pad[s * HP2 + 1:s * HP2 + 1 + H, :] = x_ref[s]

        def conv3x3_relu(src_pad, w_ref, bias):
            # 3 row-shifted (R, K) @ (K, W*Cout) MXU matmuls; K = W*Cin/W*Cout
            acc = jnp.dot(src_pad[0:R, :].astype(cdt), w_ref[0],
                          preferred_element_type=f32)
            acc = acc + jnp.dot(src_pad[1:R + 1, :].astype(cdt), w_ref[1],
                                preferred_element_type=f32)
            acc = acc + jnp.dot(src_pad[2:R + 2, :].astype(cdt), w_ref[2],
                                preferred_element_type=f32)
            return jnp.maximum(acc + bias, 0.0)

        # grid-invariant operand loads, hoisted (read once)
        b1a_v, b2a_v, bsa_v = b1a_ref[...], b2a_ref[...], bsa_ref[...]
        b1b_v, b2b_v = b1b_ref[...], b2b_ref[...]

        # ---- residual block 1 (1x1-conv skip path) ----
        h1 = conv3x3_relu(x_pad, w1a_ref, b1a_v) * mask        # (R, W*Cout)
        h_pad[1:R + 1, :] = h1
        d1 = conv3x3_relu(h_pad, w2a_ref, b2a_v)
        skip = jnp.dot(x_pad[1:R + 1, :].astype(cdt), wsa_ref[...],
                       preferred_element_type=f32) + bsa_v
        y1 = (skip + d1) * mask
        g_pad[1:R + 1, :] = y1
        for s in range(Nb):                                    # dense skip slab
            y1_ref[s * H:(s + 1) * H, :] = (
                y1[s * HP2:s * HP2 + H, :].astype(y1_ref.dtype))

        # ---- residual block 2 (identity skip: no matmul) ----
        h2 = conv3x3_relu(g_pad, w1b_ref, b1b_v) * mask
        h_pad[1:R + 1, :] = h2
        d2 = conv3x3_relu(h_pad, w2b_ref, b2b_v)
        y2 = g_pad[1:R + 1, :] + d2        # junk rows finite, ignored below
        for s in range(Nb):
            y2_ref[s * H:(s + 1) * H, :] = (
                y2[s * HP2:s * HP2 + H, :].astype(y2_ref.dtype))

        # ---- MaxPool2d(2,2): row selection first, then column selection ----
        m_rows = jnp.maximum(
            jnp.dot(re_ref[...], y2, preferred_element_type=f32),
            jnp.dot(ro_ref[...], y2, preferred_element_type=f32))
        pooled = jnp.maximum(
            jnp.dot(m_rows, ce_ref[...], preferred_element_type=f32),
            jnp.dot(m_rows, co_ref[...], preferred_element_type=f32))
        # TODO(synk): pooled last dim is (W/2)*Cout=64 (<128 lanes -> masked
        # store); packing two samples along lanes would make it dense, but the
        # pooled output is only 1/8 of the skip-output bytes.
        out_ref[...] = pooled.astype(out_ref.dtype)

    grid_spec = pltpu.PrefetchScalarGridSpec(
        num_scalar_prefetch=0,
        grid=(steps,),
        in_specs=[
            pl.BlockSpec((Nb, H, WCi), lambda n: (n, 0, 0)),
            pl.BlockSpec((3, WCi, WCo), lambda n: (0, 0, 0)),
            pl.BlockSpec((1, WCo), lambda n: (0, 0)),
            pl.BlockSpec((3, WCo, WCo), lambda n: (0, 0, 0)),
            pl.BlockSpec((1, WCo), lambda n: (0, 0)),
            pl.BlockSpec((WCi, WCo), lambda n: (0, 0)),
            pl.BlockSpec((1, WCo), lambda n: (0, 0)),
            pl.BlockSpec((3, WCo, WCo), lambda n: (0, 0, 0)),
            pl.BlockSpec((1, WCo), lambda n: (0, 0)),
            pl.BlockSpec((3, WCo, WCo), lambda n: (0, 0, 0)),
            pl.BlockSpec((1, WCo), lambda n: (0, 0)),
            pl.BlockSpec((WCo, Wp * Cout), lambda n: (0, 0)),
            pl.BlockSpec((WCo, Wp * Cout), lambda n: (0, 0)),
            pl.BlockSpec((Nb * Hp, R), lambda n: (0, 0)),
            pl.BlockSpec((Nb * Hp, R), lambda n: (0, 0)),
            pl.BlockSpec((R, 1), lambda n: (0, 0)),
        ],
        out_specs=[
            pl.BlockSpec((Nb * H, WCo), lambda n: (n, 0)),
            pl.BlockSpec((Nb * H, WCo), lambda n: (n, 0)),
            pl.BlockSpec((Nb * Hp, Wp * Cout), lambda n: (n, 0)),
        ],
        scratch_shapes=[
            pltpu.VMEM((Nb * HP2, WCi), f32),    # row-haloed stacked x
            pltpu.VMEM((Nb * HP2, WCo), f32),    # row-haloed conv1 activations
            pltpu.VMEM((Nb * HP2, WCo), f32),    # row-haloed y1
        ],
    )

    y1_f, y2_f, out_f = pl.pallas_call(
        kernel,
        out_shape=(
            jax.ShapeDtypeStruct((N * H, WCo), x_nhwc.dtype),
            jax.ShapeDtypeStruct((N * H, WCo), x_nhwc.dtype),
            jax.ShapeDtypeStruct((N * Hp, Wp * Cout), x_nhwc.dtype),
        ),
        grid_spec=grid_spec,
        compiler_params=pltpu.CompilerParams(
            dimension_semantics=(("parallel",) if steps > 1 else ("arbitrary",))),
    )(x_flat, w1a_b, b1a_t, w2a_b, b2a_t, wsa_b, bsa_t,
      w1b_b, b1b_t, w2b_b, b2b_t,
      colsel_e, colsel_o, rowsel_e, rowsel_o, rowmask)

    y1 = y1_f.reshape(N, H, W, Cout)
    y2 = y2_f.reshape(N, H, W, Cout)
    out = out_f.reshape(N, Hp, Wp, Cout)
    return out, (y1, y2)


# ----------------------------------------------------------------------------
# Pure-JAX reference (verification only)
# ----------------------------------------------------------------------------
def _ref_conv3x3(x, w, b):
    y = lax.conv_general_dilated(x, w, (1, 1), 'SAME',
                                 dimension_numbers=('NHWC', 'HWIO', 'NHWC'))
    return y + b


def _ref_down_block(x, p1, p2):
    w1a, b1a, w2a, b2a, wsa, bsa = p1
    w1b, b1b, w2b, b2b = p2
    h = jax.nn.relu(_ref_conv3x3(x, w1a, b1a))
    h = jax.nn.relu(_ref_conv3x3(h, w2a, b2a))
    y1 = jnp.einsum('nhwc,cd->nhwd', x, wsa) + bsa + h
    h = jax.nn.relu(_ref_conv3x3(y1, w1b, b1b))
    h = jax.nn.relu(_ref_conv3x3(h, w2b, b2b))
    y2 = y1 + h
    out = lax.reduce_window(y2, -jnp.inf, lax.max,
                            (1, 2, 2, 1), (1, 2, 2, 1), 'VALID')
    return out, (y1, y2)


# ----------------------------------------------------------------------------
# Deterministic parameter init (PyTorch Conv2d default-style uniform bounds)
# ----------------------------------------------------------------------------
def _conv_init(key, kh, kw, cin, cout):
    fan_in = cin * kh * kw
    bound = 1.0 / jnp.sqrt(jnp.float32(fan_in))
    kw_, kb_ = jax.random.split(key)
    w = jax.random.uniform(kw_, (kh, kw, cin, cout), jnp.float32, -bound, bound)
    b = jax.random.uniform(kb_, (cout,), jnp.float32, -bound, bound)
    return w, b


if __name__ == "__main__":
    N, Cin, H, W = 2, 4, 16, 16
    Cout = 8

    root = jax.random.PRNGKey(0)
    k = jax.random.split(root, 6)

    # ResidualBlock 1 (Cin != Cout -> 1x1 skip conv)
    w1a, b1a = _conv_init(k[0], 3, 3, Cin, Cout)
    w2a, b2a = _conv_init(k[1], 3, 3, Cout, Cout)
    wsa4, bsa = _conv_init(k[2], 1, 1, Cin, Cout)
    params1 = (w1a, b1a, w2a, b2a, wsa4.reshape(Cin, Cout), bsa)

    # ResidualBlock 2 (Cin == Cout -> identity skip, special-cased in kernel)
    w1b, b1b = _conv_init(k[3], 3, 3, Cout, Cout)
    w2b, b2b = _conv_init(k[4], 3, 3, Cout, Cout)
    params2 = (w1b, b1b, w2b, b2b)

    # Input in PyTorch NCHW convention, transposed once to NHWC at the boundary.
    x_nchw = jax.random.normal(k[5], (N, Cin, H, W), jnp.float32)
    x_nhwc = jnp.transpose(x_nchw, (0, 2, 3, 1))

    ref_out, ref_skips = _ref_down_block(x_nhwc, params1, params2)

    # ---- f32 path (exact semantics of the PyTorch float32 module) ----
    out, skips = down_block(x_nhwc, params1, params2)
    out = jax.block_until_ready(out)
    skips = jax.block_until_ready(skips)

    assert out.shape == (N, H // 2, W // 2, Cout), out.shape
    assert jnp.allclose(out, ref_out, atol=5e-4, rtol=5e-4), "pooled output mismatch"
    assert jnp.allclose(skips[0], ref_skips[0], atol=5e-4, rtol=5e-4), "skip0 mismatch"
    assert jnp.allclose(skips[1], ref_skips[1], atol=5e-4, rtol=5e-4), "skip1 mismatch"

    # ---- bf16-operand / f32-accumulate path (v6e/v7x MXU fast path) ----
    out_bf, skips_bf = down_block(x_nhwc, params1, params2,
                                  compute_dtype=jnp.bfloat16)
    out_bf = jax.block_until_ready(out_bf)
    skips_bf = jax.block_until_ready(skips_bf)
    assert jnp.allclose(out_bf, ref_out, atol=1e-1, rtol=1e-1), "bf16 pooled mismatch"
    assert jnp.allclose(skips_bf[0], ref_skips[0], atol=1e-1, rtol=1e-1), "bf16 skip0 mismatch"
    assert jnp.allclose(skips_bf[1], ref_skips[1], atol=1e-1, rtol=1e-1), "bf16 skip1 mismatch"

    print("KERNEL_OK")
</pallas_src>

<mosaic_0001>
module attributes {stable_mosaic.version = 11 : i64} {
  func.func @kernel(%arg0: i32, %arg1: memref<2x16x64xf32, #tpu.memory_space<vmem>>, %arg2: memref<3x64x128xf32, #tpu.memory_space<vmem>>, %arg3: memref<1x128xf32, #tpu.memory_space<vmem>>, %arg4: memref<3x128x128xf32, #tpu.memory_space<vmem>>, %arg5: memref<1x128xf32, #tpu.memory_space<vmem>>, %arg6: memref<64x128xf32, #tpu.memory_space<vmem>>, %arg7: memref<1x128xf32, #tpu.memory_space<vmem>>, %arg8: memref<3x128x128xf32, #tpu.memory_space<vmem>>, %arg9: memref<1x128xf32, #tpu.memory_space<vmem>>, %arg10: memref<3x128x128xf32, #tpu.memory_space<vmem>>, %arg11: memref<1x128xf32, #tpu.memory_space<vmem>>, %arg12: memref<128x64xf32, #tpu.memory_space<vmem>>, %arg13: memref<128x64xf32, #tpu.memory_space<vmem>>, %arg14: memref<16x34xf32, #tpu.memory_space<vmem>>, %arg15: memref<16x34xf32, #tpu.memory_space<vmem>>, %arg16: memref<34x1xf32, #tpu.memory_space<vmem>>, %arg17: memref<32x128xf32, #tpu.memory_space<vmem>>, %arg18: memref<32x128xf32, #tpu.memory_space<vmem>>, %arg19: memref<16x64xf32, #tpu.memory_space<vmem>>, %arg20: memref<36x64xf32, #tpu.memory_space<vmem>>, %arg21: memref<36x128xf32, #tpu.memory_space<vmem>>, %arg22: memref<36x128xf32, #tpu.memory_space<vmem>>) attributes {dimension_semantics = [#tpu.dimension_semantics<arbitrary>], iteration_bounds = array<i64: 1>, scalar_prefetch = 0 : i64, scratch_operands = 3 : i64, tpu.core_type = #tpu.core_type<tc>, window_params = [{transform_indices = @transform_0, window_bounds = array<i64: 2, 16, 64>}, {pipeline_mode = #tpu.pipeline_mode<synchronous>, transform_indices = @transform_1, window_bounds = array<i64: 3, 64, 128>}, {pipeline_mode = #tpu.pipeline_mode<synchronous>, transform_indices = @transform_2, window_bounds = array<i64: 1, 128>}, {pipeline_mode = #tpu.pipeline_mode<synchronous>, transform_indices = @transform_3, window_bounds = array<i64: 3, 128, 128>}, {pipeline_mode = #tpu.pipeline_mode<synchronous>, transform_indices = @transform_4, window_bounds = array<i64: 1, 128>}, {pipeline_mode = #tpu.pipeline_mode<synchronous>, transform_indices = @transform_5, window_bounds = array<i64: 64, 128>}, {pipeline_mode = #tpu.pipeline_mode<synchronous>, transform_indices = @transform_6, window_bounds = array<i64: 1, 128>}, {pipeline_mode = #tpu.pipeline_mode<synchronous>, transform_indices = @transform_7, window_bounds = array<i64: 3, 128, 128>}, {pipeline_mode = #tpu.pipeline_mode<synchronous>, transform_indices = @transform_8, window_bounds = array<i64: 1, 128>}, {pipeline_mode = #tpu.pipeline_mode<synchronous>, transform_indices = @transform_9, window_bounds = array<i64: 3, 128, 128>}, {pipeline_mode = #tpu.pipeline_mode<synchronous>, transform_indices = @transform_10, window_bounds = array<i64: 1, 128>}, {pipeline_mode = #tpu.pipeline_mode<synchronous>, transform_indices = @transform_11, window_bounds = array<i64: 128, 64>}, {pipeline_mode = #tpu.pipeline_mode<synchronous>, transform_indices = @transform_12, window_bounds = array<i64: 128, 64>}, {pipeline_mode = #tpu.pipeline_mode<synchronous>, transform_indices = @transform_13, window_bounds = array<i64: 16, 34>}, {pipeline_mode = #tpu.pipeline_mode<synchronous>, transform_indices = @transform_14, window_bounds = array<i64: 16, 34>}, {pipeline_mode = #tpu.pipeline_mode<synchronous>, transform_indices = @transform_15, window_bounds = array<i64: 34, 1>}, {transform_indices = @transform_16, window_bounds = array<i64: 32, 128>}, {transform_indices = @transform_17, window_bounds = array<i64: 32, 128>}, {transform_indices = @transform_18, window_bounds = array<i64: 16, 64>}]} {
    %c0 = arith.constant 0 : index
    %c0_0 = arith.constant 0 : index
    %0 = vector.load %arg16[%c0, %c0_0] : memref<34x1xf32, #tpu.memory_space<vmem>>, vector<34x1xf32>
    %cst = arith.constant 0.000000e+00 : f32
    %1 = vector.broadcast %cst : f32 to vector<1x64xf32>
    %cst_1 = arith.constant 0.000000e+00 : f32
    %2 = vector.broadcast %cst_1 : f32 to vector<1x128xf32>
    %c0_2 = arith.constant 0 : index
    %c0_3 = arith.constant 0 : index
    %3 = vector.load %arg20[%c0_2, %c0_3] : memref<36x64xf32, #tpu.memory_space<vmem>>, vector<1x64xf32>
    tpu.vector_store %arg20[%c0_2, %c0_3], %1 {strides = array<i32>} : memref<36x64xf32, #tpu.memory_space<vmem>>, vector<1x64xf32>,
    %c17 = arith.constant 17 : index
    %c0_4 = arith.constant 0 : index
    %4 = vector.load %arg20[%c17, %c0_4] : memref<36x64xf32, #tpu.memory_space<vmem>>, vector<1x64xf32>
    tpu.vector_store %arg20[%c17, %c0_4], %1 {strides = array<i32>} : memref<36x64xf32, #tpu.memory_space<vmem>>, vector<1x64xf32>,
    %c18 = arith.constant 18 : index
    %c0_5 = arith.constant 0 : index
    %5 = vector.load %arg20[%c18, %c0_5] : memref<36x64xf32, #tpu.memory_space<vmem>>, vector<1x64xf32>
    tpu.vector_store %arg20[%c18, %c0_5], %1 {strides = array<i32>} : memref<36x64xf32, #tpu.memory_space<vmem>>, vector<1x64xf32>,
    %c35 = arith.constant 35 : index
    %c0_6 = arith.constant 0 : index
    %6 = vector.load %arg20[%c35, %c0_6] : memref<36x64xf32, #tpu.memory_space<vmem>>, vector<1x64xf32>
    tpu.vector_store %arg20[%c35, %c0_6], %1 {strides = array<i32>} : memref<36x64xf32, #tpu.memory_space<vmem>>, vector<1x64xf32>,
    %c0_7 = arith.constant 0 : index
    %c0_8 = arith.constant 0 : index
    %7 = vector.load %arg21[%c0_7, %c0_8] : memref<36x128xf32, #tpu.memory_space<vmem>>, vector<1x128xf32>
    tpu.vector_store %arg21[%c0_7, %c0_8], %2 {strides = array<i32>} : memref<36x128xf32, #tpu.memory_space<vmem>>, vector<1x128xf32>,
    %c35_9 = arith.constant 35 : index
    %c0_10 = arith.constant 0 : index
    %8 = vector.load %arg21[%c35_9, %c0_10] : memref<36x128xf32, #tpu.memory_space<vmem>>, vector<1x128xf32>
    tpu.vector_store %arg21[%c35_9, %c0_10], %2 {strides = array<i32>} : memref<36x128xf32, #tpu.memory_space<vmem>>, vector<1x128xf32>,
    %c0_11 = arith.constant 0 : index
    %c0_12 = arith.constant 0 : index
    %9 = vector.load %arg22[%c0_11, %c0_12] : memref<36x128xf32, #tpu.memory_space<vmem>>, vector<1x128xf32>
    tpu.vector_store %arg22[%c0_11, %c0_12], %2 {strides = array<i32>} : memref<36x128xf32, #tpu.memory_space<vmem>>, vector<1x128xf32>,
    %c35_13 = arith.constant 35 : index
    %c0_14 = arith.constant 0 : index
    %10 = vector.load %arg22[%c35_13, %c0_14] : memref<36x128xf32, #tpu.memory_space<vmem>>, vector<1x128xf32>
    tpu.vector_store %arg22[%c35_13, %c0_14], %2 {strides = array<i32>} : memref<36x128xf32, #tpu.memory_space<vmem>>, vector<1x128xf32>,
    %c0_15 = arith.constant 0 : index
    %c0_16 = arith.constant 0 : index
    %c0_17 = arith.constant 0 : index
    %11 = vector.load %arg1[%c0_15, %c0_16, %c0_17] : memref<2x16x64xf32, #tpu.memory_space<vmem>>, vector<1x16x64xf32>
    %12 = vector.shape_cast %11 : vector<1x16x64xf32> to vector<16x64xf32>
    %c1 = arith.constant 1 : index
    %c0_18 = arith.constant 0 : index
    %13 = vector.load %arg20[%c1, %c0_18] : memref<36x64xf32, #tpu.memory_space<vmem>>, vector<16x64xf32>
    tpu.vector_store %arg20[%c1, %c0_18], %12 {strides = array<i32>} : memref<36x64xf32, #tpu.memory_space<vmem>>, vector<16x64xf32>,
    %c1_19 = arith.constant 1 : index
    %c0_20 = arith.constant 0 : index
    %c0_21 = arith.constant 0 : index
    %14 = vector.load %arg1[%c1_19, %c0_20, %c0_21] : memref<2x16x64xf32, #tpu.memory_space<vmem>>, vector<1x16x64xf32>
    %15 = vector.shape_cast %14 : vector<1x16x64xf32> to vector<16x64xf32>
    %c19 = arith.constant 19 : index
    %c0_22 = arith.constant 0 : index
    %16 = vector.load %arg20[%c19, %c0_22] : memref<36x64xf32, #tpu.memory_space<vmem>>, vector<16x64xf32>
    tpu.vector_store %arg20[%c19, %c0_22], %15 {strides = array<i32>} : memref<36x64xf32, #tpu.memory_space<vmem>>, vector<16x64xf32>,
    %c0_23 = arith.constant 0 : index
    %c0_24 = arith.constant 0 : index
    %17 = vector.load %arg3[%c0_23, %c0_24] : memref<1x128xf32, #tpu.memory_space<vmem>>, vector<1x128xf32>
    %c0_25 = arith.constant 0 : index
    %c0_26 = arith.constant 0 : index
    %18 = vector.load %arg5[%c0_25, %c0_26] : memref<1x128xf32, #tpu.memory_space<vmem>>, vector<1x128xf32>
    %c0_27 = arith.constant 0 : index
    %c0_28 = arith.constant 0 : index
    %19 = vector.load %arg7[%c0_27, %c0_28] : memref<1x128xf32, #tpu.memory_space<vmem>>, vector<1x128xf32>
    %c0_29 = arith.constant 0 : index
    %c0_30 = arith.constant 0 : index
    %20 = vector.load %arg9[%c0_29, %c0_30] : memref<1x128xf32, #tpu.memory_space<vmem>>, vector<1x128xf32>
    %c0_31 = arith.constant 0 : index
    %c0_32 = arith.constant 0 : index
    %21 = vector.load %arg11[%c0_31, %c0_32] : memref<1x128xf32, #tpu.memory_space<vmem>>, vector<1x128xf32>
    %c0_33 = arith.constant 0 : index
    %c0_34 = arith.constant 0 : index
    %22 = vector.load %arg20[%c0_33, %c0_34] : memref<36x64xf32, #tpu.memory_space<vmem>>, vector<34x64xf32>
    %c0_35 = arith.constant 0 : index
    %c0_36 = arith.constant 0 : index
    %c0_37 = arith.constant 0 : index
    %23 = vector.load %arg2[%c0_35, %c0_36, %c0_37] : memref<3x64x128xf32, #tpu.memory_space<vmem>>, vector<1x64x128xf32>
    %24 = vector.shape_cast %23 : vector<1x64x128xf32> to vector<64x128xf32>
    %cst_38 = arith.constant dense<0.000000e+00> : vector<34x128xf32>
    %25 = tpu.matmul %22, %24, %cst_38 {dimension_numbers = #tpu.dot_dimension_numbers<[1], [0], [0], [1], [0, 0, 1, 1], [], []>} : vector<34x64xf32>, vector<64x128xf32>, vector<34x128xf32> -> vector<34x128xf32>
    %c1_39 = arith.constant 1 : index
    %c0_40 = arith.constant 0 : index
    %26 = vector.load %arg20[%c1_39, %c0_40] : memref<36x64xf32, #tpu.memory_space<vmem>>, vector<34x64xf32>
    %c1_41 = arith.constant 1 : index
    %c0_42 = arith.constant 0 : index
    %c0_43 = arith.constant 0 : index
    %27 = vector.load %arg2[%c1_41, %c0_42, %c0_43] : memref<3x64x128xf32, #tpu.memory_space<vmem>>, vector<1x64x128xf32>
    %28 = vector.shape_cast %27 : vector<1x64x128xf32> to vector<64x128xf32>
    %cst_44 = arith.constant dense<0.000000e+00> : vector<34x128xf32>
    %29 = tpu.matmul %26, %28, %cst_44 {dimension_numbers = #tpu.dot_dimension_numbers<[1], [0], [0], [1], [0, 0, 1, 1], [], []>} : vector<34x64xf32>, vector<64x128xf32>, vector<34x128xf32> -> vector<34x128xf32>
    %30 = arith.addf %25, %29 : vector<34x128xf32>
    %c2 = arith.constant 2 : index
    %c0_45 = arith.constant 0 : index
    %31 = vector.load %arg20[%c2, %c0_45] : memref<36x64xf32, #tpu.memory_space<vmem>>, vector<34x64xf32>
    %c2_46 = arith.constant 2 : index
    %c0_47 = arith.constant 0 : index
    %c0_48 = arith.constant 0 : index
    %32 = vector.load %arg2[%c2_46, %c0_47, %c0_48] : memref<3x64x128xf32, #tpu.memory_space<vmem>>, vector<1x64x128xf32>
    %33 = vector.shape_cast %32 : vector<1x64x128xf32> to vector<64x128xf32>
    %cst_49 = arith.constant dense<0.000000e+00> : vector<34x128xf32>
    %34 = tpu.matmul %31, %33, %cst_49 {dimension_numbers = #tpu.dot_dimension_numbers<[1], [0], [0], [1], [0, 0, 1, 1], [], []>} : vector<34x64xf32>, vector<64x128xf32>, vector<34x128xf32> -> vector<34x128xf32>
    %35 = arith.addf %30, %34 : vector<34x128xf32>
    %36 = vector.broadcast %17 : vector<1x128xf32> to vector<34x128xf32>
    %37 = arith.addf %35, %36 : vector<34x128xf32>
    %cst_50 = arith.constant 0.000000e+00 : f32
    %38 = vector.broadcast %cst_50 : f32 to vector<34x128xf32>
    %39 = arith.maximumf %37, %38 : vector<34x128xf32>
    %40 = vector.broadcast %0 : vector<34x1xf32> to vector<34x128xf32>
    %41 = arith.mulf %39, %40 : vector<34x128xf32>
    %c1_51 = arith.constant 1 : index
    %c0_52 = arith.constant 0 : index
    %42 = vector.load %arg21[%c1_51, %c0_52] : memref<36x128xf32, #tpu.memory_space<vmem>>, vector<34x128xf32>
    tpu.vector_store %arg21[%c1_51, %c0_52], %41 {strides = array<i32>} : memref<36x128xf32, #tpu.memory_space<vmem>>, vector<34x128xf32>,
    %c0_53 = arith.constant 0 : index
    %c0_54 = arith.constant 0 : index
    %43 = vector.load %arg21[%c0_53, %c0_54] : memref<36x128xf32, #tpu.memory_space<vmem>>, vector<34x128xf32>
    %c0_55 = arith.constant 0 : index
    %c0_56 = arith.constant 0 : index
    %c0_57 = arith.constant 0 : index
    %44 = vector.load %arg4[%c0_55, %c0_56, %c0_57] : memref<3x128x128xf32, #tpu.memory_space<vmem>>, vector<1x128x128xf32>
    %45 = vector.shape_cast %44 : vector<1x128x128xf32> to vector<128x128xf32>
    %cst_58 = arith.constant dense<0.000000e+00> : vector<34x128xf32>
    %46 = tpu.matmul %43, %45, %cst_58 {dimension_numbers = #tpu.dot_dimension_numbers<[1], [0], [0], [1], [0, 0, 1, 1], [], []>} : vector<34x128xf32>, vector<128x128xf32>, vector<34x128xf32> -> vector<34x128xf32>
    %c1_59 = arith.constant 1 : index
    %c0_60 = arith.constant 0 : index
    %47 = vector.load %arg21[%c1_59, %c0_60] : memref<36x128xf32, #tpu.memory_space<vmem>>, vector<34x128xf32>
    %c1_61 = arith.constant 1 : index
    %c0_62 = arith.constant 0 : index
    %c0_63 = arith.constant 0 : index
    %48 = vector.load %arg4[%c1_61, %c0_62, %c0_63] : memref<3x128x128xf32, #tpu.memory_space<vmem>>, vector<1x128x128xf32>
    %49 = vector.shape_cast %48 : vector<1x128x128xf32> to vector<128x128xf32>
    %cst_64 = arith.constant dense<0.000000e+00> : vector<34x128xf32>
    %50 = tpu.matmul %47, %49, %cst_64 {dimension_numbers = #tpu.dot_dimension_numbers<[1], [0], [0], [1], [0, 0, 1, 1], [], []>} : vector<34x128xf32>, vector<128x128xf32>, vector<34x128xf32> -> vector<34x128xf32>
    %51 = arith.addf %46, %50 : vector<34x128xf32>
    %c2_65 = arith.constant 2 : index
    %c0_66 = arith.constant 0 : index
    %52 = vector.load %arg21[%c2_65, %c0_66] : memref<36x128xf32, #tpu.memory_space<vmem>>, vector<34x128xf32>
    %c2_67 = arith.constant 2 : index
    %c0_68 = arith.constant 0 : index
    %c0_69 = arith.constant 0 : index
    %53 = vector.load %arg4[%c2_67, %c0_68, %c0_69] : memref<3x128x128xf32, #tpu.memory_space<vmem>>, vector<1x128x128xf32>
    %54 = vector.shape_cast %53 : vector<1x128x128xf32> to vector<128x128xf32>
    %cst_70 = arith.constant dense<0.000000e+00> : vector<34x128xf32>
    %55 = tpu.matmul %52, %54, %cst_70 {dimension_numbers = #tpu.dot_dimension_numbers<[1], [0], [0], [1], [0, 0, 1, 1], [], []>} : vector<34x128xf32>, vector<128x128xf32>, vector<34x128xf32> -> vector<34x128xf32>
    %56 = arith.addf %51, %55 : vector<34x128xf32>
    %57 = vector.broadcast %18 : vector<1x128xf32> to vector<34x128xf32>
    %58 = arith.addf %56, %57 : vector<34x128xf32>
    %cst_71 = arith.constant 0.000000e+00 : f32
    %59 = vector.broadcast %cst_71 : f32 to vector<34x128xf32>
    %60 = arith.maximumf %58, %59 : vector<34x128xf32>
    %c1_72 = arith.constant 1 : index
    %c0_73 = arith.constant 0 : index
    %61 = vector.load %arg20[%c1_72, %c0_73] : memref<36x64xf32, #tpu.memory_space<vmem>>, vector<34x64xf32>
    %c0_74 = arith.constant 0 : index
    %c0_75 = arith.constant 0 : index
    %62 = vector.load %arg6[%c0_74, %c0_75] : memref<64x128xf32, #tpu.memory_space<vmem>>, vector<64x128xf32>
    %cst_76 = arith.constant dense<0.000000e+00> : vector<34x128xf32>
    %63 = tpu.matmul %61, %62, %cst_76 {dimension_numbers = #tpu.dot_dimension_numbers<[1], [0], [0], [1], [0, 0, 1, 1], [], []>} : vector<34x64xf32>, vector<64x128xf32>, vector<34x128xf32> -> vector<34x128xf32>
    %64 = vector.broadcast %19 : vector<1x128xf32> to vector<34x128xf32>
    %65 = arith.addf %63, %64 : vector<34x128xf32>
    %66 = arith.addf %65, %60 : vector<34x128xf32>
    %67 = vector.broadcast %0 : vector<34x1xf32> to vector<34x128xf32>
    %68 = arith.mulf %66, %67 : vector<34x128xf32>
    %c1_77 = arith.constant 1 : index
    %c0_78 = arith.constant 0 : index
    %69 = vector.load %arg22[%c1_77, %c0_78] : memref<36x128xf32, #tpu.memory_space<vmem>>, vector<34x128xf32>
    tpu.vector_store %arg22[%c1_77, %c0_78], %68 {strides = array<i32>} : memref<36x128xf32, #tpu.memory_space<vmem>>, vector<34x128xf32>,
    %70 = vector.extract_strided_slice %68 {offsets = [0, 0], sizes = [16, 128], strides = [1, 1]} : vector<34x128xf32> to vector<16x128xf32>
    %c0_79 = arith.constant 0 : index
    %c0_80 = arith.constant 0 : index
    %71 = vector.load %arg17[%c0_79, %c0_80] : memref<32x128xf32, #tpu.memory_space<vmem>>, vector<16x128xf32>
    tpu.vector_store %arg17[%c0_79, %c0_80], %70 {strides = array<i32>} : memref<32x128xf32, #tpu.memory_space<vmem>>, vector<16x128xf32>,
    %72 = vector.extract_strided_slice %68 {offsets = [18, 0], sizes = [16, 128], strides = [1, 1]} : vector<34x128xf32> to vector<16x128xf32>
    %c16 = arith.constant 16 : index
    %c0_81 = arith.constant 0 : index
    %73 = vector.load %arg17[%c16, %c0_81] : memref<32x128xf32, #tpu.memory_space<vmem>>, vector<16x128xf32>
    tpu.vector_store %arg17[%c16, %c0_81], %72 {strides = array<i32>} : memref<32x128xf32, #tpu.memory_space<vmem>>, vector<16x128xf32>,
    %c0_82 = arith.constant 0 : index
    %c0_83 = arith.constant 0 : index
    %74 = vector.load %arg22[%c0_82, %c0_83] : memref<36x128xf32, #tpu.memory_space<vmem>>, vector<34x128xf32>
    %c0_84 = arith.constant 0 : index
    %c0_85 = arith.constant 0 : index
    %c0_86 = arith.constant 0 : index
    %75 = vector.load %arg8[%c0_84, %c0_85, %c0_86] : memref<3x128x128xf32, #tpu.memory_space<vmem>>, vector<1x128x128xf32>
    %76 = vector.shape_cast %75 : vector<1x128x128xf32> to vector<128x128xf32>
    %cst_87 = arith.constant dense<0.000000e+00> : vector<34x128xf32>
    %77 = tpu.matmul %74, %76, %cst_87 {dimension_numbers = #tpu.dot_dimension_numbers<[1], [0], [0], [1], [0, 0, 1, 1], [], []>} : vector<34x128xf32>, vector<128x128xf32>, vector<34x128xf32> -> vector<34x128xf32>
    %c1_88 = arith.constant 1 : index
    %c0_89 = arith.constant 0 : index
    %78 = vector.load %arg22[%c1_88, %c0_89] : memref<36x128xf32, #tpu.memory_space<vmem>>, vector<34x128xf32>
    %c1_90 = arith.constant 1 : index
    %c0_91 = arith.constant 0 : index
    %c0_92 = arith.constant 0 : index
    %79 = vector.load %arg8[%c1_90, %c0_91, %c0_92] : memref<3x128x128xf32, #tpu.memory_space<vmem>>, vector<1x128x128xf32>
    %80 = vector.shape_cast %79 : vector<1x128x128xf32> to vector<128x128xf32>
    %cst_93 = arith.constant dense<0.000000e+00> : vector<34x128xf32>
    %81 = tpu.matmul %78, %80, %cst_93 {dimension_numbers = #tpu.dot_dimension_numbers<[1], [0], [0], [1], [0, 0, 1, 1], [], []>} : vector<34x128xf32>, vector<128x128xf32>, vector<34x128xf32> -> vector<34x128xf32>
    %82 = arith.addf %77, %81 : vector<34x128xf32>
    %c2_94 = arith.constant 2 : index
    %c0_95 = arith.constant 0 : index
    %83 = vector.load %arg22[%c2_94, %c0_95] : memref<36x128xf32, #tpu.memory_space<vmem>>, vector<34x128xf32>
    %c2_96 = arith.constant 2 : index
    %c0_97 = arith.constant 0 : index
    %c0_98 = arith.constant 0 : index
    %84 = vector.load %arg8[%c2_96, %c0_97, %c0_98] : memref<3x128x128xf32, #tpu.memory_space<vmem>>, vector<1x128x128xf32>
    %85 = vector.shape_cast %84 : vector<1x128x128xf32> to vector<128x128xf32>
    %cst_99 = arith.constant dense<0.000000e+00> : vector<34x128xf32>
    %86 = tpu.matmul %83, %85, %cst_99 {dimension_numbers = #tpu.dot_dimension_numbers<[1], [0], [0], [1], [0, 0, 1, 1], [], []>} : vector<34x128xf32>, vector<128x128xf32>, vector<34x128xf32> -> vector<34x128xf32>
    %87 = arith.addf %82, %86 : vector<34x128xf32>
    %88 = vector.broadcast %20 : vector<1x128xf32> to vector<34x128xf32>
    %89 = arith.addf %87, %88 : vector<34x128xf32>
    %cst_100 = arith.constant 0.000000e+00 : f32
    %90 = vector.broadcast %cst_100 : f32 to vector<34x128xf32>
    %91 = arith.maximumf %89, %90 : vector<34x128xf32>
    %92 = vector.broadcast %0 : vector<34x1xf32> to vector<34x128xf32>
    %93 = arith.mulf %91, %92 : vector<34x128xf32>
    %c1_101 = arith.constant 1 : index
    %c0_102 = arith.constant 0 : index
    %94 = vector.load %arg21[%c1_101, %c0_102] : memref<36x128xf32, #tpu.memory_space<vmem>>, vector<34x128xf32>
    tpu.vector_store %arg21[%c1_101, %c0_102], %93 {strides = array<i32>} : memref<36x128xf32, #tpu.memory_space<vmem>>, vector<34x128xf32>,
    %c0_103 = arith.constant 0 : index
    %c0_104 = arith.constant 0 : index
    %95 = vector.load %arg21[%c0_103, %c0_104] : memref<36x128xf32, #tpu.memory_space<vmem>>, vector<34x128xf32>
    %c0_105 = arith.constant 0 : index
    %c0_106 = arith.constant 0 : index
    %c0_107 = arith.constant 0 : index
    %96 = vector.load %arg10[%c0_105, %c0_106, %c0_107] : memref<3x128x128xf32, #tpu.memory_space<vmem>>, vector<1x128x128xf32>
    %97 = vector.shape_cast %96 : vector<1x128x128xf32> to vector<128x128xf32>
    %cst_108 = arith.constant dense<0.000000e+00> : vector<34x128xf32>
    %98 = tpu.matmul %95, %97, %cst_108 {dimension_numbers = #tpu.dot_dimension_numbers<[1], [0], [0], [1], [0, 0, 1, 1], [], []>} : vector<34x128xf32>, vector<128x128xf32>, vector<34x128xf32> -> vector<34x128xf32>
    %c1_109 = arith.constant 1 : index
    %c0_110 = arith.constant 0 : index
    %99 = vector.load %arg21[%c1_109, %c0_110] : memref<36x128xf32, #tpu.memory_space<vmem>>, vector<34x128xf32>
    %c1_111 = arith.constant 1 : index
    %c0_112 = arith.constant 0 : index
    %c0_113 = arith.constant 0 : index
    %100 = vector.load %arg10[%c1_111, %c0_112, %c0_113] : memref<3x128x128xf32, #tpu.memory_space<vmem>>, vector<1x128x128xf32>
    %101 = vector.shape_cast %100 : vector<1x128x128xf32> to vector<128x128xf32>
    %cst_114 = arith.constant dense<0.000000e+00> : vector<34x128xf32>
    %102 = tpu.matmul %99, %101, %cst_114 {dimension_numbers = #tpu.dot_dimension_numbers<[1], [0], [0], [1], [0, 0, 1, 1], [], []>} : vector<34x128xf32>, vector<128x128xf32>, vector<34x128xf32> -> vector<34x128xf32>
    %103 = arith.addf %98, %102 : vector<34x128xf32>
    %c2_115 = arith.constant 2 : index
    %c0_116 = arith.constant 0 : index
    %104 = vector.load %arg21[%c2_115, %c0_116] : memref<36x128xf32, #tpu.memory_space<vmem>>, vector<34x128xf32>
    %c2_117 = arith.constant 2 : index
    %c0_118 = arith.constant 0 : index
    %c0_119 = arith.constant 0 : index
    %105 = vector.load %arg10[%c2_117, %c0_118, %c0_119] : memref<3x128x128xf32, #tpu.memory_space<vmem>>, vector<1x128x128xf32>
    %106 = vector.shape_cast %105 : vector<1x128x128xf32> to vector<128x128xf32>
    %cst_120 = arith.constant dense<0.000000e+00> : vector<34x128xf32>
    %107 = tpu.matmul %104, %106, %cst_120 {dimension_numbers = #tpu.dot_dimension_numbers<[1], [0], [0], [1], [0, 0, 1, 1], [], []>} : vector<34x128xf32>, vector<128x128xf32>, vector<34x128xf32> -> vector<34x128xf32>
    %108 = arith.addf %103, %107 : vector<34x128xf32>
    %109 = vector.broadcast %21 : vector<1x128xf32> to vector<34x128xf32>
    %110 = arith.addf %108, %109 : vector<34x128xf32>
    %cst_121 = arith.constant 0.000000e+00 : f32
    %111 = vector.broadcast %cst_121 : f32 to vector<34x128xf32>
    %112 = arith.maximumf %110, %111 : vector<34x128xf32>
    %c1_122 = arith.constant 1 : index
    %c0_123 = arith.constant 0 : index
    %113 = vector.load %arg22[%c1_122, %c0_123] : memref<36x128xf32, #tpu.memory_space<vmem>>, vector<34x128xf32>
    %114 = arith.addf %113, %112 : vector<34x128xf32>
    %115 = vector.extract_strided_slice %114 {offsets = [0, 0], sizes = [16, 128], strides = [1, 1]} : vector<34x128xf32> to vector<16x128xf32>
    %c0_124 = arith.constant 0 : index
    %c0_125 = arith.constant 0 : index
    %116 = vector.load %arg18[%c0_124, %c0_125] : memref<32x128xf32, #tpu.memory_space<vmem>>, vector<16x128xf32>
    tpu.vector_store %arg18[%c0_124, %c0_125], %115 {strides = array<i32>} : memref<32x128xf32, #tpu.memory_space<vmem>>, vector<16x128xf32>,
    %117 = vector.extract_strided_slice %114 {offsets = [18, 0], sizes = [16, 128], strides = [1, 1]} : vector<34x128xf32> to vector<16x128xf32>
    %c16_126 = arith.constant 16 : index
    %c0_127 = arith.constant 0 : index
    %118 = vector.load %arg18[%c16_126, %c0_127] : memref<32x128xf32, #tpu.memory_space<vmem>>, vector<16x128xf32>
    tpu.vector_store %arg18[%c16_126, %c0_127], %117 {strides = array<i32>} : memref<32x128xf32, #tpu.memory_space<vmem>>, vector<16x128xf32>,
    %c0_128 = arith.constant 0 : index
    %c0_129 = arith.constant 0 : index
    %119 = vector.load %arg14[%c0_128, %c0_129] : memref<16x34xf32, #tpu.memory_space<vmem>>, vector<16x34xf32>
    %cst_130 = arith.constant dense<0.000000e+00> : vector<16x128xf32>
    %120 = tpu.matmul %119, %114, %cst_130 {dimension_numbers = #tpu.dot_dimension_numbers<[1], [0], [0], [1], [0, 0, 1, 1], [], []>} : vector<16x34xf32>, vector<34x128xf32>, vector<16x128xf32> -> vector<16x128xf32>
    %c0_131 = arith.constant 0 : index
    %c0_132 = arith.constant 0 : index
    %121 = vector.load %arg15[%c0_131, %c0_132] : memref<16x34xf32, #tpu.memory_space<vmem>>, vector<16x34xf32>
    %cst_133 = arith.constant dense<0.000000e+00> : vector<16x128xf32>
    %122 = tpu.matmul %121, %114, %cst_133 {dimension_numbers = #tpu.dot_dimension_numbers<[1], [0], [0], [1], [0, 0, 1, 1], [], []>} : vector<16x34xf32>, vector<34x128xf32>, vector<16x128xf32> -> vector<16x128xf32>
    %123 = arith.maximumf %120, %122 : vector<16x128xf32>
    %c0_134 = arith.constant 0 : index
    %c0_135 = arith.constant 0 : index
    %124 = vector.load %arg12[%c0_134, %c0_135] : memref<128x64xf32, #tpu.memory_space<vmem>>, vector<128x64xf32>
    %cst_136 = arith.constant dense<0.000000e+00> : vector<16x64xf32>
    %125 = tpu.matmul %123, %124, %cst_136 {dimension_numbers = #tpu.dot_dimension_numbers<[1], [0], [0], [1], [0, 0, 1, 1], [], []>} : vector<16x128xf32>, vector<128x64xf32>, vector<16x64xf32> -> vector<16x64xf32>
    %c0_137 = arith.constant 0 : index
    %c0_138 = arith.constant 0 : index
    %126 = vector.load %arg13[%c0_137, %c0_138] : memref<128x64xf32, #tpu.memory_space<vmem>>, vector<128x64xf32>
    %cst_139 = arith.constant dense<0.000000e+00> : vector<16x64xf32>
    %127 = tpu.matmul %123, %126, %cst_139 {dimension_numbers = #tpu.dot_dimension_numbers<[1], [0], [0], [1], [0, 0, 1, 1], [], []>} : vector<16x128xf32>, vector<128x64xf32>, vector<16x64xf32> -> vector<16x64xf32>
    %128 = arith.maximumf %125, %127 : vector<16x64xf32>
    %c0_140 = arith.constant 0 : index
    %c0_141 = arith.constant 0 : index
    %129 = vector.load %arg19[%c0_140, %c0_141] : memref<16x64xf32, #tpu.memory_space<vmem>>, vector<16x64xf32>
    tpu.vector_store %arg19[%c0_140, %c0_141], %128 {strides = array<i32>} : memref<16x64xf32, #tpu.memory_space<vmem>>, vector<16x64xf32>,
    return
  }
  func.func @transform_0(%arg0: i32) -> (i32, i32, i32) {
    %c0_i32 = arith.constant 0 : i32
    %c0_i32_0 = arith.constant 0 : i32
    %c0_i32_1 = arith.constant 0 : i32
    return %arg0, %c0_i32, %c0_i32_0 : i32, i32, i32
  }
  func.func @transform_1(%arg0: i32) -> (i32, i32, i32) {
    %c0_i32 = arith.constant 0 : i32
    %c0_i32_0 = arith.constant 0 : i32
    %c0_i32_1 = arith.constant 0 : i32
    %c0_i32_2 = arith.constant 0 : i32
    return %c0_i32, %c0_i32_0, %c0_i32_1 : i32, i32, i32
  }
  func.func @transform_2(%arg0: i32) -> (i32, i32) {
    %c0_i32 = arith.constant 0 : i32
    %c0_i32_0 = arith.constant 0 : i32
    %c0_i32_1 = arith.constant 0 : i32
    return %c0_i32, %c0_i32_0 : i32, i32
  }
  func.func @transform_3(%arg0: i32) -> (i32, i32, i32) {
    %c0_i32 = arith.constant 0 : i32
    %c0_i32_0 = arith.constant 0 : i32
    %c0_i32_1 = arith.constant 0 : i32
    %c0_i32_2 = arith.constant 0 : i32
    return %c0_i32, %c0_i32_0, %c0_i32_1 : i32, i32, i32
  }
  func.func @transform_4(%arg0: i32) -> (i32, i32) {
    %c0_i32 = arith.constant 0 : i32
    %c0_i32_0 = arith.constant 0 : i32
    %c0_i32_1 = arith.constant 0 : i32
    return %c0_i32, %c0_i32_0 : i32, i32
  }
  func.func @transform_5(%arg0: i32) -> (i32, i32) {
    %c0_i32 = arith.constant 0 : i32
    %c0_i32_0 = arith.constant 0 : i32
    %c0_i32_1 = arith.constant 0 : i32
    return %c0_i32, %c0_i32_0 : i32, i32
  }
  func.func @transform_6(%arg0: i32) -> (i32, i32) {
    %c0_i32 = arith.constant 0 : i32
    %c0_i32_0 = arith.constant 0 : i32
    %c0_i32_1 = arith.constant 0 : i32
    return %c0_i32, %c0_i32_0 : i32, i32
  }
  func.func @transform_7(%arg0: i32) -> (i32, i32, i32) {
    %c0_i32 = arith.constant 0 : i32
    %c0_i32_0 = arith.constant 0 : i32
    %c0_i32_1 = arith.constant 0 : i32
    %c0_i32_2 = arith.constant 0 : i32
    return %c0_i32, %c0_i32_0, %c0_i32_1 : i32, i32, i32
  }
  func.func @transform_8(%arg0: i32) -> (i32, i32) {
    %c0_i32 = arith.constant 0 : i32
    %c0_i32_0 = arith.constant 0 : i32
    %c0_i32_1 = arith.constant 0 : i32
    return %c0_i32, %c0_i32_0 : i32, i32
  }
  func.func @transform_9(%arg0: i32) -> (i32, i32, i32) {
    %c0_i32 = arith.constant 0 : i32
    %c0_i32_0 = arith.constant 0 : i32
    %c0_i32_1 = arith.constant 0 : i32
    %c0_i32_2 = arith.constant 0 : i32
    return %c0_i32, %c0_i32_0, %c0_i32_1 : i32, i32, i32
  }
  func.func @transform_10(%arg0: i32) -> (i32, i32) {
    %c0_i32 = arith.constant 0 : i32
    %c0_i32_0 = arith.constant 0 : i32
    %c0_i32_1 = arith.constant 0 : i32
    return %c0_i32, %c0_i32_0 : i32, i32
  }
  func.func @transform_11(%arg0: i32) -> (i32, i32) {
    %c0_i32 = arith.constant 0 : i32
    %c0_i32_0 = arith.constant 0 : i32
    %c0_i32_1 = arith.constant 0 : i32
    return %c0_i32, %c0_i32_0 : i32, i32
  }
  func.func @transform_12(%arg0: i32) -> (i32, i32) {
    %c0_i32 = arith.constant 0 : i32
    %c0_i32_0 = arith.constant 0 : i32
    %c0_i32_1 = arith.constant 0 : i32
    return %c0_i32, %c0_i32_0 : i32, i32
  }
  func.func @transform_13(%arg0: i32) -> (i32, i32) {
    %c0_i32 = arith.constant 0 : i32
    %c0_i32_0 = arith.constant 0 : i32
    %c0_i32_1 = arith.constant 0 : i32
    return %c0_i32, %c0_i32_0 : i32, i32
  }
  func.func @transform_14(%arg0: i32) -> (i32, i32) {
    %c0_i32 = arith.constant 0 : i32
    %c0_i32_0 = arith.constant 0 : i32
    %c0_i32_1 = arith.constant 0 : i32
    return %c0_i32, %c0_i32_0 : i32, i32
  }
  func.func @transform_15(%arg0: i32) -> (i32, i32) {
    %c0_i32 = arith.constant 0 : i32
    %c0_i32_0 = arith.constant 0 : i32
    %c0_i32_1 = arith.constant 0 : i32
    return %c0_i32, %c0_i32_0 : i32, i32
  }
  func.func @transform_16(%arg0: i32) -> (i32, i32) {
    %c0_i32 = arith.constant 0 : i32
    %c0_i32_0 = arith.constant 0 : i32
    return %arg0, %c0_i32 : i32, i32
  }
  func.func @transform_17(%arg0: i32) -> (i32, i32) {
    %c0_i32 = arith.constant 0 : i32
    %c0_i32_0 = arith.constant 0 : i32
    return %arg0, %c0_i32 : i32, i32
  }
  func.func @transform_18(%arg0: i32) -> (i32, i32) {
    %c0_i32 = arith.constant 0 : i32
    %c0_i32_0 = arith.constant 0 : i32
    return %arg0, %c0_i32 : i32, i32
  }
}

</mosaic_0001>

<bundles_post_ra>
// kernel: tpu_custom_call.1
= control target key start
LH: loop header
LB: loop body
LE: loop exit
PB: predicated region body
PF: predicated region fallthrough
CT: control target
= control target key end

     0   :  { %s4817_s0 = inlined_call_operand.hbm [shape: f32[2,16,64], index: 0, kind: input, shape index: {}]   ;;  %s4818_s1 = inlined_call_operand.hbm [shape: f32[3,64,128], index: 1, kind: input, shape index: {}]   ;;  %s4819_s2 = inlined_call_operand.vmem [shape: f32[1,128], index: 2, kind: input, shape index: {}]   ;;  %s4820_s3 = inlined_call_operand.vmem [shape: f32[3,128,128], index: 3, kind: input, shape index: {}]   ;;  %s4821_s4 = inlined_call_operand.vmem [shape: f32[1,128], index: 4, kind: input, shape index: {}]   ;;  %s4822_s5 = inlined_call_operand.hbm [shape: f32[64,128], index: 5, kind: input, shape index: {}]   ;;  %s4823_s6 = inlined_call_operand.hbm [shape: f32[1,128], index: 6, kind: input, shape index: {}]   ;;  %s4824_s7 = inlined_call_operand.hbm [shape: f32[3,128,128], index: 7, kind: input, shape index: {}]   ;;  %s4825_s8 = inlined_call_operand.hbm [shape: f32[1,128], index: 8, kind: input, shape index: {}]   ;;  %s4826_s9 = inlined_call_operand.hbm [shape: f32[3,128,128], index: 9, kind: input, shape index: {}]   ;;  %s4827_s10 = inlined_call_operand.hbm [shape: f32[1,128], index: 10, kind: input, shape index: {}]   ;;  %s4828_s11 = inlined_call_operand.vmem [shape: f32[128,64], index: 11, kind: input, shape index: {}]   ;;  %s4829_s12 = inlined_call_operand.vmem [shape: f32[128,64], index: 12, kind: input, shape index: {}]   ;;  %s4830_s13 = inlined_call_operand.vmem [shape: f32[16,34], index: 13, kind: input, shape index: {}]   ;;  %s4831_s14 = inlined_call_operand.hbm [shape: f32[16,34], index: 14, kind: input, shape index: {}]   ;;  %s4832_s15 = inlined_call_operand.vmem [shape: f32[34,1], index: 15, kind: input, shape index: {}]   ;;  %s4833_s16 = inlined_call_operand.hbm [shape: f32[32,128], index: 16, kind: output, shape index: {0}]   ;;  %s4834_s17 = inlined_call_operand.hbm [shape: f32[32,128], index: 17, kind: output, shape index: {1}]   ;;  %s4835_s18 = inlined_call_operand.hbm [shape: f32[16,64], index: 18, kind: output, shape index: {2}]  }
   0x1   :  { %4840 = sst [smem:[#allocation31_spill]] %s4817_s0 }
   0x2   :  { %4841 = sst [smem:[#allocation32_spill]] %s4818_s1 }
   0x3   :  { %4842 = sst [smem:[#allocation33_spill]] %s4819_s2 }
   0x4   :  { %24 = vsyncpa [#allocation6], 0 }
   0x5   :  { %25 = vsyncpa [#allocation9], 0 }
   0x6   :  { %26 = vsyncpa [#allocation12], 0 }
   0x7   :  { %27 = vsyncpa [#allocation15], 0 }
   0x8   :  { %28 = vsyncpa [#allocation18], 0 }
   0x9   :  { %29 = vsyncpa [#allocation7], 0 }
   0xa   :  { %30 = vsyncpa [#allocation22], 0  ;;  %s3902_s27 = smov [#allocation8]   ;;  %s3903_s29 = smov [#allocation11]  }
   0xb   :  { %s48_s28 = sshll.u32 %s3902_s27, 4  ;;  %s79_s30 = sshll.u32 %s3903_s29, 4  ;;  %s49_s28 = int_to_ptr.vmem [resolvable:$true] %s48_s28  ;;  %s4015_s30 = int_to_ptr.vmem [resolvable:$true] %s79_s30 }
   0xc   :  { %s4843_s1 = sld [smem:[#allocation32_spill]] }
  0x12   :  { %s3624_s20 = scalar_lea.hbm %s4843_s1, 3072 }
  0x13   :  { %p3625_p0 = scmp.ne.s32.totalorder %s4843_s1, %s3624_s20  ;;  %p3628_p1 = scmp.lt.u32.totalorder %s3624_s20, %s4843_s1 }
  0x15   :  { %p3630_p2 = pnand %p3628_p1, %p3625_p0 }
  0x17   :  { %3633 = shalt.err (!%p3630_p2)
}
  0x18   :  { %s3634_s24 = scalar_lea.vmem %s49_s28, 3072  ;;  %p3639_p4 = scmp.lt.s32.totalorder %s49_s28, %s49_s28 }
  0x19   :  { %p3635_p3 = scmp.ne.s32.totalorder %s49_s28, %s3634_s24  ;;  %p3640_p5 = scmp.lt.s32.totalorder %s3634_s24, %s3634_s24 }
  0x1b   :  { %p3641_p6 = por %p3640_p5, %p3639_p4 }
  0x1d   :  { %p3642_p7 = pnand %p3641_p6, %p3635_p3 }
  0x1f   :  { %3645 = shalt.err (!%p3642_p7)
}
  0x20   :  { %s4838_s25 = smov 128   ;;  %s3905_s26 = smov 8  }
  0x21   :  { %54 = dma.hbm_to_vmem [thread:$0]  %s4843_s1, 3072, %s49_s28, [#allocation9], %s4838_s25, %s4838_s25, %s3905_s26  }
  0x22   :  { %s3646_s20 = scalar_lea.hbm %s4823_s6, 16 }
  0x23   :  { %p3647_p8 = scmp.ne.s32.totalorder %s4823_s6, %s3646_s20  ;;  %p3650_p9 = scmp.lt.u32.totalorder %s3646_s20, %s4823_s6 }
  0x25   :  { %p3652_p10 = pnand %p3650_p9, %p3647_p8 }
  0x27   :  { %3655 = shalt.err (!%p3652_p10)
}
  0x28   :  { %s3656_s24 = scalar_lea.vmem %s4015_s30, 16  ;;  %s3660_s28 = scalar_lea.vmem %s4015_s30, 32 }
  0x29   :  { %p3657_p11 = scmp.ne.s32.totalorder %s4015_s30, %s3656_s24  ;;  %p3661_p12 = scmp.lt.s32.totalorder %s4015_s30, %s4015_s30 }
  0x2a   :  { %p3662_p13 = scmp.lt.s32.totalorder %s3660_s28, %s3656_s24 }
  0x2c   :  { %p3663_p0 = por %p3662_p13, %p3661_p12 }
  0x2e   :  { %p3664_p1 = pnand %p3663_p0, %p3657_p11 }
  0x30   :  { %3667 = shalt.err (!%p3664_p1)
}
  0x31   :  { %82 = dma.hbm_to_vmem [thread:$0]  %s4823_s6, 16, %s4015_s30, [#allocation12]  }
  0x32   :  { %s3906_s29 = smov [#allocation14]   ;;  %s3907_s19 = smov [#allocation17]  }
  0x33   :  { %s101_s0 = sshll.u32 %s3906_s29, 4  ;;  %s123_s20 = sshll.u32 %s3907_s19, 4  ;;  %s102_s0 = int_to_ptr.vmem [resolvable:$true] %s101_s0  ;;  %s124_s20 = int_to_ptr.vmem [resolvable:$true] %s123_s20 }
  0x34   :  { %s3668_s2 = scalar_lea.hbm %s4825_s8, 16 }
  0x35   :  { %p3669_p2 = scmp.ne.s32.totalorder %s4825_s8, %s3668_s2  ;;  %p3672_p3 = scmp.lt.u32.totalorder %s3668_s2, %s4825_s8 }
  0x37   :  { %p3674_p4 = pnand %p3672_p3, %p3669_p2 }
  0x39   :  { %3677 = shalt.err (!%p3674_p4)
}
  0x3a   :  { %s3678_s6 = scalar_lea.vmem %s102_s0, 16  ;;  %s3682_s30 = scalar_lea.vmem %s102_s0, 32 }
  0x3b   :  { %p3679_p5 = scmp.ne.s32.totalorder %s102_s0, %s3678_s6  ;;  %p3683_p6 = scmp.lt.s32.totalorder %s102_s0, %s102_s0 }
  0x3c   :  { %p3684_p7 = scmp.lt.s32.totalorder %s3682_s30, %s3678_s6 }
  0x3e   :  { %p3685_p8 = por %p3684_p7, %p3683_p6 }
  0x40   :  { %p3686_p9 = pnand %p3685_p8, %p3679_p5 }
  0x42   :  { %3689 = shalt.err (!%p3686_p9)
}
  0x43   :  { %104 = dma.hbm_to_vmem [thread:$0]  %s4825_s8, 16, %s102_s0, [#allocation15]  }
  0x44   :  { %s3690_s21 = scalar_lea.hbm %s4827_s10, 16 }
  0x45   :  { %p3691_p10 = scmp.ne.s32.totalorder %s4827_s10, %s3690_s21  ;;  %p3694_p11 = scmp.lt.u32.totalorder %s3690_s21, %s4827_s10 }
  0x47   :  { %p3696_p12 = pnand %p3694_p11, %p3691_p10 }
  0x49   :  { %3699 = shalt.err (!%p3696_p12)
}
  0x4a   :  { %s3700_s24 = scalar_lea.vmem %s124_s20, 16  ;;  %s3704_s28 = scalar_lea.vmem %s124_s20, 32 }
  0x4b   :  { %p3701_p13 = scmp.ne.s32.totalorder %s124_s20, %s3700_s24  ;;  %p3705_p0 = scmp.lt.s32.totalorder %s124_s20, %s124_s20 }
  0x4c   :  { %p3706_p1 = scmp.lt.s32.totalorder %s3704_s28, %s3700_s24 }
  0x4e   :  { %p3707_p2 = por %p3706_p1, %p3705_p0 }
  0x50   :  { %p3708_p3 = pnand %p3707_p2, %p3701_p13 }
  0x52   :  { %3711 = shalt.err (!%p3708_p3)
}
  0x53   :  { %126 = dma.hbm_to_vmem [thread:$0]  %s4827_s10, 16, %s124_s20, [#allocation18]  }
  0x54   :  { %s3908_s6 = smov [#allocation5]   ;;  %s3909_s1 = smov [#allocation10]  }
  0x55   :  { %s36_s30 = sshll.u32 %s3908_s6, 4  ;;  %s66_s27 = sshll.u32 %s3909_s1, 4  ;;  %s37_s30 = int_to_ptr.vmem [resolvable:$true] %s36_s30  ;;  %s4074_s27 = int_to_ptr.vmem [resolvable:$true] %s66_s27 }
  0x56   :  { %s4844_s21 = sld [smem:[#allocation31_spill]] }
  0x5c   :  { %s3712_s25 = scalar_lea.hbm %s4844_s21, 512 }
  0x5d   :  { %p3713_p4 = scmp.ne.s32.totalorder %s4844_s21, %s3712_s25  ;;  %p3716_p5 = scmp.lt.u32.totalorder %s3712_s25, %s4844_s21 }
  0x5f   :  { %p3718_p6 = pnand %p3716_p5, %p3713_p4 }
  0x61   :  { %3721 = shalt.err (!%p3718_p6)
}
  0x62   :  { %s3722_s10 = scalar_lea.vmem %s37_s30, 512  ;;  %p3727_p8 = scmp.lt.s32.totalorder %s37_s30, %s37_s30 }
  0x63   :  { %p3723_p7 = scmp.ne.s32.totalorder %s37_s30, %s3722_s10  ;;  %p3728_p9 = scmp.lt.s32.totalorder %s3722_s10, %s3722_s10 }
  0x65   :  { %p3729_p10 = por %p3728_p9, %p3727_p8 }
  0x67   :  { %p3730_p11 = pnand %p3729_p10, %p3723_p7 }
  0x69   :  { %3733 = shalt.err (!%p3730_p11)
}
  0x6a   :  { %s4845_s20 = smov 128   ;;  %s3734_s1 = scalar_lea.hbm %s4822_s5, 1024 }
  0x6b   :  { %42 = dma.hbm_to_vmem [thread:$0]  %s4844_s21, 512, %s37_s30, [#allocation6], %s4845_s20, %s4845_s20, %s3905_s26  }
  0x6c   :  { %p3735_p12 = scmp.ne.s32.totalorder %s4822_s5, %s3734_s1  ;;  %p3738_p13 = scmp.lt.u32.totalorder %s3734_s1, %s4822_s5 }
  0x6e   :  { %p3740_p0 = pnand %p3738_p13, %p3735_p12 }
  0x70   :  { %3743 = shalt.err (!%p3740_p0)
}
  0x71   :  { %s3744_s2 = scalar_lea.vmem %s4074_s27, 1024  ;;  %p3749_p2 = scmp.lt.s32.totalorder %s4074_s27, %s4074_s27 }
  0x72   :  { %p3745_p1 = scmp.ne.s32.totalorder %s4074_s27, %s3744_s2  ;;  %p3750_p3 = scmp.lt.s32.totalorder %s3744_s2, %s3744_s2 }
  0x74   :  { %p3751_p4 = por %p3750_p3, %p3749_p2 }
  0x76   :  { %p3752_p5 = pnand %p3751_p4, %p3745_p1 }
  0x78   :  { %3755 = shalt.err (!%p3752_p5)
}
  0x79   :  { %72 = dma.hbm_to_vmem [thread:$0]  %s4822_s5, 1024, %s4074_s27, [#allocation9], %s4845_s20, %s4845_s20, %s3905_s26  }
  0x7a   :  { %s3910_s23 = smov [#allocation13]   ;;  %s3911_s10 = smov [#allocation16]  }
  0x7b   :  { %s88_s24 = sshll.u32 %s3910_s23, 4  ;;  %s110_s28 = sshll.u32 %s3911_s10, 4  ;;  %s89_s24 = int_to_ptr.vmem [resolvable:$true] %s88_s24  ;;  %s4111_s28 = int_to_ptr.vmem [resolvable:$true] %s110_s28 }
  0x7c   :  { %s3756_s6 = scalar_lea.hbm %s4824_s7, 6144 }
  0x7d   :  { %p3757_p6 = scmp.ne.s32.totalorder %s4824_s7, %s3756_s6  ;;  %p3760_p7 = scmp.lt.u32.totalorder %s3756_s6, %s4824_s7 }
  0x7f   :  { %p3762_p8 = pnand %p3760_p7, %p3757_p6 }
  0x81   :  { %3765 = shalt.err (!%p3762_p8)
}
  0x82   :  { %s3766_s5 = scalar_lea.vmem %s89_s24, 6144  ;;  %p3771_p10 = scmp.lt.s32.totalorder %s89_s24, %s89_s24 }
  0x83   :  { %p3767_p9 = scmp.ne.s32.totalorder %s89_s24, %s3766_s5  ;;  %p3772_p11 = scmp.lt.s32.totalorder %s3766_s5, %s3766_s5 }
  0x85   :  { %p3773_p12 = por %p3772_p11, %p3771_p10 }
  0x87   :  { %p3774_p13 = pnand %p3773_p12, %p3767_p9 }
  0x89   :  { %3777 = shalt.err (!%p3774_p13)
}
  0x8a   :  { %94 = dma.hbm_to_vmem [thread:$0]  %s4824_s7, 6144, %s89_s24, [#allocation12], %s4845_s20, %s4845_s20, %s3905_s26  }
  0x8b   :  { %s3778_s21 = scalar_lea.hbm %s4826_s9, 6144 }
  0x8c   :  { %p3779_p0 = scmp.ne.s32.totalorder %s4826_s9, %s3778_s21  ;;  %p3782_p1 = scmp.lt.u32.totalorder %s3778_s21, %s4826_s9 }
  0x8e   :  { %p3784_p2 = pnand %p3782_p1, %p3779_p0 }
  0x90   :  { %3787 = shalt.err (!%p3784_p2)
}
  0x91   :  { %s3788_s6 = scalar_lea.vmem %s4111_s28, 6144  ;;  %p3793_p4 = scmp.lt.s32.totalorder %s4111_s28, %s4111_s28 }
  0x92   :  { %p3789_p3 = scmp.ne.s32.totalorder %s4111_s28, %s3788_s6  ;;  %p3794_p5 = scmp.lt.s32.totalorder %s3788_s6, %s3788_s6 }
  0x94   :  { %p3795_p6 = por %p3794_p5, %p3793_p4 }
  0x96   :  { %p3796_p7 = pnand %p3795_p6, %p3789_p3 }
  0x98   :  { %3799 = shalt.err (!%p3796_p7)
}
  0x99   :  { %116 = dma.hbm_to_vmem [thread:$0]  %s4826_s9, 6144, %s4111_s28, [#allocation15], %s4845_s20, %s4845_s20, %s3905_s26  }
  0x9a   :  { %s3912_s1 = smov [#allocation19]   ;;  %s3800_s5 = scalar_lea.hbm %s4831_s14, 256 }
  0x9b   :  { %s138_s29 = sshll.u32 %s3912_s1, 4  ;;  %p3801_p8 = scmp.ne.s32.totalorder %s4831_s14, %s3800_s5  ;;  %s139_s29 = int_to_ptr.vmem [resolvable:$true] %s138_s29 }
  0x9c   :  { %p3804_p9 = scmp.lt.u32.totalorder %s3800_s5, %s4831_s14 }
  0x9e   :  { %p3806_p10 = pnand %p3804_p9, %p3801_p8 }
  0xa0   :  { %3809 = shalt.err (!%p3806_p10)
}
  0xa1   :  { %s3810_s21 = scalar_lea.vmem %s139_s29, 256  ;;  %p3815_p12 = scmp.lt.s32.totalorder %s139_s29, %s139_s29 }
  0xa2   :  { %p3811_p11 = scmp.ne.s32.totalorder %s139_s29, %s3810_s21  ;;  %p3816_p13 = scmp.lt.s32.totalorder %s3810_s21, %s3810_s21 }
  0xa4   :  { %p3817_p0 = por %p3816_p13, %p3815_p12 }
  0xa6   :  { %p3818_p1 = pnand %p3817_p0, %p3811_p11 }
  0xa8   :  { %3821 = shalt.err (!%p3818_p1)
}
  0xa9   :  { %144 = dma.hbm_to_vmem [thread:$0]  %s4831_s14, 256, %s139_s29, [#allocation18], %s4845_s20, %s4845_s20, %s3905_s26  }
  0xaa   :  { %3888 = dma.done.wait [#allocation6], 512  }
  0xab   :  { %3889 = vsyncadd [#allocation6], 4294966784 }
  0xac   :  { %3890 = dma.done.wait [#allocation9], 4096  }
  0xad   :  { %3891 = vsyncadd [#allocation9], 4294963200 }
  0xae   :  { %3892 = dma.done.wait [#allocation12], 6160  }
  0xaf   :  { %3893 = vsyncadd [#allocation12], 4294961136 }
  0xb0   :  { %3894 = dma.done.wait [#allocation15], 6160  }
  0xb1   :  { %3895 = vsyncadd [#allocation15], 4294961136 }
  0xb2   :  { %3896 = dma.done.wait [#allocation18], 272  }
  0xb3   :  { %3897 = vsyncadd [#allocation18], 4294967024  ;;  %v3913_v0 = vmov 0.0|0.0   ;;  %v3914_v1 = vmov 0.0   ;;  %vm179_vm0 = vcmask 516096   ;;  %vm3915_vm1 = vmmov 0  }
  0xb4   :  { %3260 = vmatprep.subr.bf16.mxu0 %v3913_v0  ;;  %3272 = vmatprep.subr.bf16.mxu1 %v3913_v0  ;;  %184 = vst [vmem:[#allocation3] sm:$0x1] %v3914_v1  ;;  %185 = vst [vmem:[#allocation3 + $0x23] sm:$0x1] %v3914_v1  ;;  %v3916_v2 = vmov 0   ;;  %v222_v3 = vld [vmem:[#allocation8 + $0x40] sm:$0xff] }
  0xb5   :  { %186 = vst [vmem:[#allocation4] sm:$0x1] %v3914_v1  ;;  %187 = vst [vmem:[#allocation4 + $0x23] sm:$0x1] %v3914_v1  ;;  %2633 = vmatprep.mubr.msk.f32.mxu0 %vm3915_vm1, %v3914_v1  ;;  %2664 = vmatprep.mubr.msk.f32.mxu1 %vm3915_vm1, %v3914_v1  ;;  %v223_v4 = vld [vmem:[#allocation8 + $0x48] sm:$0xff]  ;;  %v208_v5 = vld [vmem:[#allocation8] sm:$0xff] }
  0xb6   :  { %180 = vst.msk [vmem:[#allocation2] sm:$0x1] %vm179_vm0, %v3914_v1  ;;  %181 = vst.msk [vmem:[#allocation2 + $0x11] sm:$0x1] %vm179_vm0, %v3914_v1  ;;  %3622 = vset.pattern.permute.xlu0 %v3916_v2  ;;  %3623 = vset.pattern.permute.xlu1 %v3916_v2  ;;  %v3261_v6 = vpack.c.bf16 %v223_v4, %v222_v3  ;;  %v209_v7 = vld [vmem:[#allocation8 + $0x8] sm:$0xff]  ;;  %v224_v8 = vld [vmem:[#allocation8 + $0x50] sm:$0xff] }
  0xb7   :  { %182 = vst.msk [vmem:[#allocation2 + $0x12] sm:$0x1] %vm179_vm0, %v3914_v1  ;;  %183 = vst.msk [vmem:[#allocation2 + $0x23] sm:$0x1] %vm179_vm0, %v3914_v1  ;;  %v225_v9 = vld [vmem:[#allocation8 + $0x58] sm:$0xff]  ;;  %v3273_v10 = vpack.c.bf16 %v209_v7, %v208_v5  ;;  %v210_v11 = vld [vmem:[#allocation8 + $0x10] sm:$0xff] }
  0xb8   :  { %v211_v12 = vld [vmem:[#allocation8 + $0x18] sm:$0xff]  ;;  %3262 = vmatpush3.bf16.msra.mxu0 %v3261_v6  ;;  %v3264_v13 = vpack.c.bf16 %v225_v9, %v224_v8  ;;  %vm190_vm2 = vcmask 523264   ;;  %v226_v15 = vld [vmem:[#allocation8 + $0x60] sm:$0xff]  ;;  %v227_v16 = vld [vmem:[#allocation8 + $0x68] sm:$0xff]  ;;  %s4846_s5 = sld [smem:[#allocation33_spill]]  ;;  %vm1854_vm3 = vcmask 277504  }
  0xb9   :  { %3274 = vmatpush3.bf16.msra.mxu1 %v3273_v10  ;;  %3263 = vmatprep.subr.bf16.mxu0 %v3913_v0  ;;  %v3276_v14 = vpack.c.bf16 %v211_v12, %v210_v11  ;;  %v212_v17 = vld [vmem:[#allocation8 + $0x20] sm:$0xff]  ;;  %v213_v18 = vld [vmem:[#allocation8 + $0x28] sm:$0xff]  ;;  %v194_v21 = vld [vmem:[#allocation5 + $0x10] sm:$0xff]  ;;  %v3267_v22 = vpack.c.bf16 %v227_v16, %v226_v15  ;;  %vm1861_vm4 = vcmask 1041408  }
  0xba   :  { %3275 = vmatprep.subr.bf16.mxu1 %v3913_v0  ;;  %v188_v19 = vld [vmem:[#allocation5] sm:$0xff]  ;;  %v189_v20 = vld [vmem:[#allocation5 + $0x8] sm:$0xff]  ;;  %196 = vst.msk [vmem:[#allocation2 + $0x13] sm:$0xff] %vm190_vm2, %v194_v21  ;;  %v195_v23 = vld [vmem:[#allocation5 + $0x18] sm:$0xff]  ;;  %v3279_v24 = vpack.c.bf16 %v213_v18, %v212_v17 }
  0xbb   :  { %191 = vst.msk [vmem:[#allocation2 + $0x1] sm:$0xff] %vm190_vm2, %v188_v19  ;;  %192 = vst.msk [vmem:[#allocation2 + $0x9] sm:$0xff] %vm190_vm2, %v189_v20  ;;  %v228_v25 = vld [vmem:[#allocation8 + $0x70] sm:$0xff]  ;;  %v229_v26 = vld [vmem:[#allocation8 + $0x78] sm:$0xff] }
  0xbc   :  { %3265 = vmatpush3.bf16.msra.mxu0 %v3264_v13  ;;  %197 = vst.msk [vmem:[#allocation2 + $0x1b] sm:$0xff] %vm190_vm2, %v195_v23  ;;  %v214_v27 = vld [vmem:[#allocation8 + $0x30] sm:$0xff]  ;;  %v215_v28 = vld [vmem:[#allocation8 + $0x38] sm:$0xff]  ;;  %v174_v29 = vld [vmem:[%s4832_s15] sm:$0xff]  ;;  %v3270_v31 = vpack.c.bf16 %v229_v26, %v228_v25 }
  0xbd   :  { %3277 = vmatpush3.bf16.msra.mxu1 %v3276_v14  ;;  %3266 = vmatprep.subr.bf16.mxu0 %v3913_v0  ;;  %v176_v30 = vld [vmem:[%s4832_s15 + $0x10] sm:$0xff]  ;;  %v175_v32 = vld [vmem:[%s4832_s15 + $0x8] sm:$0xff]  ;;  %v3282_v33 = vpack.c.bf16 %v215_v28, %v214_v27  ;;  %v177_v34 = vld [vmem:[%s4832_s15 + $0x18] sm:$0xff] }
  0xbe   :  { %3278 = vmatprep.subr.bf16.mxu1 %v3913_v0  ;;  %582 = vperm.xlu0 %3622, %v174_v29   ;;  %v446_v35 = vld [vmem:[#allocation8 + $0x80] sm:$0xff]  ;;  %v447_v36 = vld [vmem:[#allocation8 + $0x88] sm:$0xff]  ;;  %v448_v41 = vld [vmem:[#allocation8 + $0x90] sm:$0xff] }
  0xbf   :  { %592 = vperm.xlu1 %3623, %v176_v30   ;;  %v178_v38 = vld [vmem:[%s4832_s15 + $0x20] sm:$0x3]  ;;  %v3285_v40 = vpack.c.bf16 %v447_v36, %v446_v35  ;;  %v449_v42 = vld [vmem:[#allocation8 + $0x98] sm:$0xff]  ;;  %v450_v46 = vld [vmem:[#allocation8 + $0xa0] sm:$0xff] }
  0xc0   :  { %3268 = vmatpush3.bf16.msra.mxu0 %v3267_v22  ;;  %v3288_v45 = vpack.c.bf16 %v449_v42, %v448_v41  ;;  %v451_v47 = vld [vmem:[#allocation8 + $0xa8] sm:$0xff]  ;;  %v452_v51 = vld [vmem:[#allocation8 + $0xb0] sm:$0xff]  ;;  %v453_v52 = vld [vmem:[#allocation8 + $0xb8] sm:$0xff] }
  0xc1   :  { %3280 = vmatpush3.bf16.msra.mxu1 %v3279_v24  ;;  %3269 = vmatprep.subr.bf16.mxu0 %v3913_v0  ;;  %v4221_v48 = vld [vmem:[#allocation2 + $0x11] sm:$0xff]  ;;  %v3291_v50 = vpack.c.bf16 %v451_v47, %v450_v46  ;;  %v3294_v55 = vpack.c.bf16 %v453_v52, %v452_v51  ;;  %v2279_v63 = vld [vmem:[%s4820_s3 + $0x80] sm:$0xff]  ;;  %v2280_v2 = vld [vmem:[%s4820_s3 + $0x88] sm:$0xff] }
  0xc2   :  { %3281 = vmatprep.subr.bf16.mxu1 %v3913_v0  ;;  %587 = vperm.xlu0 %3622, %v175_v32   ;;  %v4199_v37 = vld [vmem:[#allocation2 + $0x1] sm:$0xff]  ;;  %v4211_v43 = vld [vmem:[#allocation2 + $0x9] sm:$0xff]  ;;  %v442_v60 = vld [vmem:[#allocation2 + $0x12] sm:$0xff]  ;;  %v3297_v3 = vpack.c.bf16 %v2280_v2, %v2279_v63 }
  0xc3   :  { %597 = vperm.xlu1 %3623, %v177_v34   ;;  %v203_v39 = vld [vmem:[#allocation2] sm:$0xff]  ;;  %v204_v44 = vld [vmem:[#allocation2 + $0x8] sm:$0xff]  ;;  %v205_v49 = vld [vmem:[#allocation2 + $0x10] sm:$0xff] }
  0xc4   :  { %3271 = vmatpush3.bf16.msra.mxu0 %v3270_v31  ;;  %v4231_v53 = vld [vmem:[#allocation2 + $0x19] sm:$0xff]  ;;  %v220_v56 = vld [vmem:[#allocation2 + $0x21] sm:$0x3]  ;;  %v441_v59 = vld [vmem:[#allocation2 + $0xa] sm:$0xff] }
  0xc5   :  { %3283 = vmatpush3.bf16.msra.mxu1 %v3282_v33  ;;  %3284 = vmatprep.subr.bf16.mxu0 %v3913_v0  ;;  %v206_v54 = vld [vmem:[#allocation2 + $0x18] sm:$0xff]  ;;  %v207_v57 = vld [vmem:[#allocation2 + $0x20] sm:$0x3]  ;;  %v440_v58 = vld [vmem:[#allocation2 + $0x2] sm:$0xff] }
  0xc6   :  { %3296 = vmatprep.subr.bf16.mxu1 %v3913_v0  ;;  %602 = vperm.xlu0 %3622, %v178_v38   ;;  %v443_v61 = vld [vmem:[#allocation2 + $0x1a] sm:$0xff]  ;;  %v444_v62 = vld [vmem:[#allocation2 + $0x22] sm:$0x3]  ;;  %v2281_v4 = vld [vmem:[%s4820_s3 + $0x90] sm:$0xff] }
  0xc7   :  { %2634 = vmatmul.mubr.msk.f32.vlgmr.msra.gmra.mrb[0].mxu0 %vm190_vm2, %v4199_v37  ;;  %v2282_v5 = vld [vmem:[%s4820_s3 + $0x98] sm:$0xff]  ;;  %v2283_v7 = vld [vmem:[%s4820_s3 + $0xa0] sm:$0xff]  ;;  %v2284_v8 = vld [vmem:[%s4820_s3 + $0xa8] sm:$0xff] }
  0xc8   :  { %2665 = vmatmul.mubr.msk.f32.vlgmr.msra.gmra.mrb[0].mxu1 %vm190_vm2, %v203_v39  ;;  %2636 = vmatprep.mubr.msk.f32.mxu0 %vm3915_vm1, %v3914_v1  ;;  %v3300_v6 = vpack.c.bf16 %v2282_v5, %v2281_v4  ;;  %v620_v9 = vld [vmem:[%s4820_s3] sm:$0xff]  ;;  %v621_v10 = vld [vmem:[%s4820_s3 + $0x8] sm:$0xff]  ;;  %v3303_v11 = vpack.c.bf16 %v2284_v8, %v2283_v7  ;;  %v2285_v13 = vld [vmem:[%s4820_s3 + $0xb0] sm:$0xff] }
  0xc9   :  { %2667 = vmatprep.mubr.msk.f32.mxu1 %vm3915_vm1, %v3914_v1  ;;  %3286 = vmatpush3.bf16.msra.mxu0 %v3285_v40  ;;  %v3321_v12 = vpack.c.bf16 %v621_v10, %v620_v9  ;;  %v2286_v14 = vld [vmem:[%s4820_s3 + $0xb8] sm:$0xff]  ;;  %v622_v15 = vld [vmem:[%s4820_s3 + $0x10] sm:$0xff]  ;;  %v2287_v19 = vld [vmem:[%s4820_s3 + $0xc0] sm:$0xff] }
  0xca   :  { %3287 = vmatprep.subr.bf16.mxu0 %v3913_v0  ;;  %3298 = vmatpush3.bf16.msra.mxu1 %v3297_v3  ;;  %v623_v16 = vld [vmem:[%s4820_s3 + $0x18] sm:$0xff]  ;;  %v3306_v17 = vpack.c.bf16 %v2286_v14, %v2285_v13  ;;  %v2288_v20 = vld [vmem:[%s4820_s3 + $0xc8] sm:$0xff]  ;;  %v624_v21 = vld [vmem:[%s4820_s3 + $0x20] sm:$0xff] }
  0xcb   :  { %2637 = vmatmul.mubr.msk.f32.gmra.mrb[2].mxu0 %vm190_vm2, %v4211_v43  ;;  %3299 = vmatprep.subr.bf16.mxu1 %v3913_v0  ;;  %v3324_v18 = vpack.c.bf16 %v623_v16, %v622_v15  ;;  %v625_v22 = vld [vmem:[%s4820_s3 + $0x28] sm:$0xff]  ;;  %v3309_v23 = vpack.c.bf16 %v2288_v20, %v2287_v19  ;;  %v2289_v25 = vld [vmem:[%s4820_s3 + $0xd0] sm:$0xff]  ;;  %v2290_v26 = vld [vmem:[%s4820_s3 + $0xd8] sm:$0xff] }
  0xcc   :  { %2668 = vmatmul.mubr.msk.f32.gmra.mrb[2].mxu1 %vm190_vm2, %v204_v44  ;;  %2639 = vmatprep.mubr.msk.f32.mxu0 %vm3915_vm1, %v3914_v1  ;;  %v3327_v24 = vpack.c.bf16 %v625_v22, %v624_v21  ;;  %v626_v27 = vld [vmem:[%s4820_s3 + $0x30] sm:$0xff]  ;;  %v627_v28 = vld [vmem:[%s4820_s3 + $0x38] sm:$0xff]  ;;  %v3312_v29 = vpack.c.bf16 %v2290_v26, %v2289_v25  ;;  %v2291_v31 = vld [vmem:[%s4820_s3 + $0xe0] sm:$0xff] }
  0xcd   :  { %2670 = vmatprep.mubr.msk.f32.mxu1 %vm3915_vm1, %v3914_v1  ;;  %3289 = vmatpush3.bf16.msra.mxu0 %v3288_v45  ;;  %v3330_v30 = vpack.c.bf16 %v627_v28, %v626_v27  ;;  %v2292_v32 = vld [vmem:[%s4820_s3 + $0xe8] sm:$0xff]  ;;  %v628_v33 = vld [vmem:[%s4820_s3 + $0x40] sm:$0xff]  ;;  %v2293_v38 = vld [vmem:[%s4820_s3 + $0xf0] sm:$0xff] }
  0xce   :  { %3290 = vmatprep.subr.bf16.mxu0 %v3913_v0  ;;  %3301 = vmatpush3.bf16.msra.mxu1 %v3300_v6  ;;  %v629_v34 = vld [vmem:[%s4820_s3 + $0x48] sm:$0xff]  ;;  %v3315_v35 = vpack.c.bf16 %v2292_v32, %v2291_v31  ;;  %v2294_v39 = vld [vmem:[%s4820_s3 + $0xf8] sm:$0xff]  ;;  %v630_v40 = vld [vmem:[%s4820_s3 + $0x50] sm:$0xff] }
  0xcf   :  { %2640 = vmatmul.mubr.msk.f32.gmra.mrb[4].mxu0 %vm190_vm2, %v4221_v48  ;;  %3302 = vmatprep.subr.bf16.mxu1 %v3913_v0  ;;  %v3333_v36 = vpack.c.bf16 %v629_v34, %v628_v33  ;;  %v631_v41 = vld [vmem:[%s4820_s3 + $0x58] sm:$0xff]  ;;  %v3318_v42 = vpack.c.bf16 %v2294_v39, %v2293_v38  ;;  %v632_v45 = vld [vmem:[%s4820_s3 + $0x60] sm:$0xff]  ;;  %v633_v46 = vld [vmem:[%s4820_s3 + $0x68] sm:$0xff] }
  0xd0   :  { %2671 = vmatmul.mubr.msk.f32.gmra.mrb[4].mxu1 %vm190_vm2, %v205_v49  ;;  %2642 = vmatprep.mubr.msk.f32.mxu0 %vm3915_vm1, %v3914_v1  ;;  %v3336_v44 = vpack.c.bf16 %v631_v41, %v630_v40  ;;  %v3339_v47 = vpack.c.bf16 %v633_v46, %v632_v45  ;;  %v634_v49 = vld [vmem:[%s4820_s3 + $0x70] sm:$0xff]  ;;  %v2278_v16 = vld [vmem:[%s4846_s5] ss:$0 sm:$0xff]  ;;  %v2296_v22 = vld [vmem:[%s4820_s3 + $0x108] sm:$0xff] }
  0xd1   :  { %2673 = vmatprep.mubr.msk.f32.mxu1 %vm3915_vm1, %v3914_v1  ;;  %3292 = vmatpush3.bf16.msra.mxu0 %v3291_v50  ;;  %v635_v50 = vld [vmem:[%s4820_s3 + $0x78] sm:$0xff]  ;;  %v2295_v21 = vld [vmem:[%s4820_s3 + $0x100] sm:$0xff]  ;;  %v2297_v31 = vld [vmem:[%s4820_s3 + $0x110] sm:$0xff] }
  0xd2   :  { %3293 = vmatprep.subr.bf16.mxu0 %v3913_v0  ;;  %3304 = vmatpush3.bf16.msra.mxu1 %v3303_v11  ;;  %v3342_v51 = vpack.c.bf16 %v635_v50, %v634_v49  ;;  %v3345_v28 = vpack.c.bf16 %v2296_v22, %v2295_v21  ;;  %v2298_v32 = vld [vmem:[%s4820_s3 + $0x118] sm:$0xff]  ;;  %v2300_v45 = vld [vmem:[%s4820_s3 + $0x128] sm:$0xff]  ;;  %v981_v21 = vld [vmem:[#allocation10 + $0x28] sm:$0xff] }
  0xd3   :  { %2643 = vmatmul.mubr.msk.f32.gmra.mrb[6].mxu0 %vm190_vm2, %v4231_v53  ;;  %3305 = vmatprep.subr.bf16.mxu1 %v3913_v0  ;;  %v3348_v40 = vpack.c.bf16 %v2298_v32, %v2297_v31  ;;  %v2309_v31 = vld [vmem:[%s4820_s3 + $0x170] sm:$0xff]  ;;  %v2310_v32 = vld [vmem:[%s4820_s3 + $0x178] sm:$0xff] }
  0xd4   :  { %2674 = vmatmul.mubr.msk.f32.gmra.mrb[6].mxu1 %vm190_vm2, %v206_v54  ;;  %2645 = vmatprep.mubr.msk.f32.mxu0 %vm3915_vm1, %v3914_v1 }
  0xd5   :  { %2676 = vmatprep.mubr.msk.f32.mxu1 %vm3915_vm1, %v3914_v1  ;;  %3295 = vmatpush3.bf16.msra.mxu0 %v3294_v55 }
  0xd6   :  { %3320 = vmatprep.subr.bf16.mxu0 %v3913_v0  ;;  %3307 = vmatpush3.bf16.msra.mxu1 %v3306_v17 }
  0xd7   :  { %2646 = vmatmul.mubr.msk.f32.gmra.mrb[8].mxu0 %vm190_vm2, %v220_v56  ;;  %3308 = vmatprep.subr.bf16.mxu1 %v3913_v0 }
  0xd8   :  { %2677 = vmatmul.mubr.msk.f32.gmra.mrb[8].mxu1 %vm190_vm2, %v207_v57  ;;  %2695 = vmatprep.mubr.msk.f32.mxu0 %vm3915_vm1, %v3914_v1 }
  0xd9   :  { %2742 = vmatprep.mubr.msk.f32.mxu1 %vm3915_vm1, %v3914_v1 }
  0xda   :  { %3310 = vmatpush3.bf16.msra.mxu1 %v3309_v23 }
  0xdb   :  { %2696 = vmatmul.mubr.msk.f32.vlgmr.msra.gmra.mrb[10].mxu0 %vm190_vm2, %v440_v58  ;;  %3311 = vmatprep.subr.bf16.mxu1 %v3913_v0 }
  0xdc   :  { %2698 = vmatprep.mubr.msk.f32.mxu0 %vm3915_vm1, %v3914_v1  ;;  %3322 = vmatpush3.bf16.msra.mxu0 %v3321_v12 }
  0xdd   :  { %3323 = vmatprep.subr.bf16.mxu0 %v3913_v0 }
  0xde   :  { %3313 = vmatpush3.bf16.msra.mxu1 %v3312_v29 }
  0xdf   :  { %2699 = vmatmul.mubr.msk.f32.gmra.mrb[12].mxu0 %vm190_vm2, %v441_v59  ;;  %3314 = vmatprep.subr.bf16.mxu1 %v3913_v0 }
  0xe0   :  { %2701 = vmatprep.mubr.msk.f32.mxu0 %vm3915_vm1, %v3914_v1  ;;  %3325 = vmatpush3.bf16.msra.mxu0 %v3324_v18 }
  0xe1   :  { %3326 = vmatprep.subr.bf16.mxu0 %v3913_v0 }
  0xe2   :  { %3316 = vmatpush3.bf16.msra.mxu1 %v3315_v35 }
  0xe3   :  { %2702 = vmatmul.mubr.msk.f32.gmra.mrb[14].mxu0 %vm190_vm2, %v442_v60  ;;  %3317 = vmatprep.subr.bf16.mxu1 %v3913_v0 }
  0xe4   :  { %2704 = vmatprep.mubr.msk.f32.mxu0 %vm3915_vm1, %v3914_v1  ;;  %3328 = vmatpush3.bf16.msra.mxu0 %v3327_v24 }
  0xe5   :  { %3329 = vmatprep.subr.bf16.mxu0 %v3913_v0 }
  0xe6   :  { %3319 = vmatpush3.bf16.msra.mxu1 %v3318_v42 }
  0xe7   :  { %2705 = vmatmul.mubr.msk.f32.gmra.mrb[16].mxu0 %vm190_vm2, %v443_v61  ;;  %3344 = vmatprep.subr.bf16.mxu1 %v3913_v0 }
  0xe8   :  { %2707 = vmatprep.mubr.msk.f32.mxu0 %vm3915_vm1, %v3914_v1  ;;  %3331 = vmatpush3.bf16.msra.mxu0 %v3330_v30 }
  0xe9   :  { %3332 = vmatprep.subr.bf16.mxu0 %v3913_v0 }
  0xeb   :  { %2708 = vmatmul.mubr.msk.f32.gmra.mrb[18].mxu0 %vm190_vm2, %v444_v62 }
  0xec   :  { %2789 = vmatprep.mubr.msk.f32.mxu0 %vm3915_vm1, %v3914_v1  ;;  %3334 = vmatpush3.bf16.msra.mxu0 %v3333_v36 }
  0xed   :  { %3335 = vmatprep.subr.bf16.mxu0 %v3913_v0 }
  0xf0   :  { %3337 = vmatpush3.bf16.msra.mxu0 %v3336_v44  ;;  %v2299_v44 = vld [vmem:[%s4820_s3 + $0x120] sm:$0xff] }
  0xf1   :  { %3338 = vmatprep.subr.bf16.mxu0 %v3913_v0 }
  0xf4   :  { %3340 = vmatpush3.bf16.msra.mxu0 %v3339_v47 }
  0xf5   :  { %3341 = vmatprep.subr.bf16.mxu0 %v3913_v0 }
  0xf8   :  { %3343 = vmatpush3.bf16.msra.mxu0 %v3342_v51  ;;  %v976_v51 = vld [vmem:[#allocation10] sm:$0xff] }
  0xf9   :  { %3368 = vmatprep.subr.bf16.mxu0 %v3913_v0 }
 0x13d   :  { %v4386_v23 = vpop.permute.xlu0 %582 }
 0x13e   :  { %v4397_v39 = vpop.permute.xlu1 %592 }
 0x141   :  { %v4395_v38 = vpop.permute.xlu0 %587 }
 0x19a   :  { %v311_v52 = vpop.f32.mrb[0].mxu0 }
 0x19b   :  { %v416_v54 = vpop.f32.mrb[0].mxu1  ;;  %v2635_v55 = vpop.f32.mrb[1].mxu0 }
 0x19c   :  { %v417_v56 = vadd.f32 %v416_v54, %v311_v52  ;;  %v2666_v57 = vpop.f32.mrb[1].mxu1  ;;  %v977_v52 = vld [vmem:[#allocation10 + $0x8] sm:$0xff]  ;;  %v3351_v54 = vpack.c.bf16 %v2300_v45, %v2299_v44 }
 0x19d   :  { %v2301_v57 = vld [vmem:[%s4820_s3 + $0x130] sm:$0xff]  ;;  %v1143_v44 = vld [vmem:[#allocation13 + $0x88] sm:$0xff] }
 0x19e   :  { %v316_v58 = vpop.f32.mrb[2].mxu0 }
 0x19f   :  { %v421_v59 = vpop.f32.mrb[2].mxu1  ;;  %v2638_v60 = vpop.f32.mrb[3].mxu0 }
 0x1a0   :  { %v422_v61 = vadd.f32 %v421_v59, %v316_v58  ;;  %v2669_v62 = vpop.f32.mrb[3].mxu1  ;;  %v2302_v58 = vld [vmem:[%s4820_s3 + $0x138] sm:$0xff] }
 0x1a1   :  { %v3369_v62 = vpack.c.bf16 %v977_v52, %v976_v51  ;;  %v1147_v51 = vld [vmem:[#allocation13 + $0xa8] sm:$0xff]  ;;  %v1120_v52 = vld [vmem:[#allocation13] sm:$0xff] }
 0x1a2   :  { %v321_v63 = vpop.f32.mrb[4].mxu0 }
 0x1a3   :  { %v426_v2 = vpop.f32.mrb[4].mxu1  ;;  %v2641_v3 = vpop.f32.mrb[5].mxu0 }
 0x1a4   :  { %v427_v4 = vadd.f32 %v426_v2, %v321_v63  ;;  %v2672_v5 = vpop.f32.mrb[5].mxu1 }
 0x1a6   :  { %v326_v6 = vpop.f32.mrb[6].mxu0 }
 0x1a7   :  { %v431_v7 = vpop.f32.mrb[6].mxu1  ;;  %v2644_v8 = vpop.f32.mrb[7].mxu0 }
 0x1a8   :  { %v432_v9 = vadd.f32 %v431_v7, %v326_v6  ;;  %v2675_v10 = vpop.f32.mrb[7].mxu1  ;;  %v2303_v7 = vld [vmem:[%s4820_s3 + $0x140] sm:$0xff]  ;;  %v2304_v8 = vld [vmem:[%s4820_s3 + $0x148] sm:$0xff] }
 0x1a9   :  { %v978_v10 = vld [vmem:[#allocation10 + $0x10] sm:$0xff] }
 0x1aa   :  { %v331_v11 = vpop.f32.mrb[8].mxu0 }
 0x1ab   :  { %v436_v12 = vpop.f32.mrb[8].mxu1  ;;  %v2647_v13 = vpop.f32.mrb[9].mxu0 }
 0x1ac   :  { %v437_v14 = vadd.f32 %v436_v12, %v331_v11  ;;  %v2678_v15 = vpop.f32.mrb[9].mxu1  ;;  %v979_v11 = vld [vmem:[#allocation10 + $0x18] sm:$0xff]  ;;  %v4433_v13 = vpop.permute.xlu0 %602 }
 0x1ae   :  { %v535_v17 = vpop.f32.mrb[10].mxu0 }
 0x1af   :  { %v559_v18 = vadd.f32 %v535_v17, %v417_v56  ;;  %v2697_v19 = vpop.f32.mrb[11].mxu0  ;;  %v2306_v17 = vld [vmem:[%s4820_s3 + $0x158] sm:$0xff] }
 0x1b1   :  { %v570_v20 = vadd.f32 %v2278_v16, %v559_v18  ;;  %v3372_v18 = vpack.c.bf16 %v979_v11, %v978_v10  ;;  %v1126_v10 = vld [vmem:[#allocation13 + $0x30] sm:$0xff]  ;;  %v1127_v11 = vld [vmem:[#allocation13 + $0x38] sm:$0xff] }
 0x1b2   :  { %v540_v24 = vpop.f32.mrb[12].mxu0 }
 0x1b3   :  { %v575_v25 = vmax.f32 %v570_v20, 0.0  ;;  %v560_v26 = vadd.f32 %v540_v24, %v422_v61  ;;  %v2700_v27 = vpop.f32.mrb[13].mxu0  ;;  %v4419_v61 = vpop.permute.xlu1 %597  ;;  %v980_v20 = vld [vmem:[#allocation10 + $0x20] sm:$0xff]  ;;  %v2307_v24 = vld [vmem:[%s4820_s3 + $0x160] sm:$0xff] }
 0x1b5   :  { %v605_v29 = vmul.f32 %v4386_v23, %v575_v25  ;;  %v571_v30 = vadd.f32 %v2278_v16, %v560_v26  ;;  %v2308_v25 = vld [vmem:[%s4820_s3 + $0x168] sm:$0xff]  ;;  %v3375_v26 = vpack.c.bf16 %v981_v21, %v980_v20 }
 0x1b6   :  { %v545_v33 = vpop.f32.mrb[14].mxu0  ;;  %v1156_v21 = vld [vmem:[#allocation13 + $0xf0] sm:$0xff] }
 0x1b7   :  { %610 = vst [vmem:[#allocation3 + $0x1] sm:$0xff] %v605_v29  ;;  %v576_v34 = vmax.f32 %v571_v30, 0.0  ;;  %v561_v35 = vadd.f32 %v545_v33, %v427_v4  ;;  %v2703_v36 = vpop.f32.mrb[15].mxu0  ;;  %2743 = vmatmul.mubr.f32.vlgmr.msra.gmra.mrb[10].mxu1 %v605_v29  ;;  %v3354_v4 = vpack.c.bf16 %v2302_v58, %v2301_v57  ;;  %v983_v29 = vld [vmem:[#allocation10 + $0x38] sm:$0xff]  ;;  %v3363_v30 = vpack.c.bf16 %v2308_v25, %v2307_v24 }
 0x1b8   :  { %3346 = vmatpush3.bf16.msra.mxu1 %v3345_v28  ;;  %2745 = vmatprep.mubr.msk.f32.mxu1 %vm3915_vm1, %v3914_v1  ;;  %v982_v28 = vld [vmem:[#allocation10 + $0x30] sm:$0xff]  ;;  %v3366_v36 = vpack.c.bf16 %v2310_v32, %v2309_v31  ;;  %v1149_v58 = vld [vmem:[#allocation13 + $0xb8] sm:$0xff] }
 0x1b9   :  { %v606_v41 = vmul.f32 %v4395_v38, %v576_v34  ;;  %v572_v42 = vadd.f32 %v2278_v16, %v561_v35  ;;  %3347 = vmatprep.subr.bf16.mxu1 %v3913_v0  ;;  %v3378_v33 = vpack.c.bf16 %v983_v29, %v982_v28  ;;  %v1148_v57 = vld [vmem:[#allocation13 + $0xb0] sm:$0xff]  ;;  %v1131_v25 = vld [vmem:[#allocation13 + $0x58] sm:$0xff]  ;;  %v1132_v28 = vld [vmem:[#allocation13 + $0x60] sm:$0xff] }
 0x1ba   :  { %v550_v46 = vpop.f32.mrb[16].mxu0  ;;  %v1130_v24 = vld [vmem:[#allocation13 + $0x50] sm:$0xff]  ;;  %v1133_v29 = vld [vmem:[#allocation13 + $0x68] sm:$0xff]  ;;  %v1135_v32 = vld [vmem:[#allocation13 + $0x78] sm:$0xff] }
 0x1bb   :  { %611 = vst [vmem:[#allocation3 + $0x9] sm:$0xff] %v606_v41  ;;  %v577_v47 = vmax.f32 %v572_v42, 0.0  ;;  %v562_v49 = vadd.f32 %v550_v46, %v432_v9  ;;  %v2706_v50 = vpop.f32.mrb[17].mxu0  ;;  %2746 = vmatmul.mubr.f32.gmra.mrb[12].mxu1 %v606_v41  ;;  %v1144_v46 = vld [vmem:[#allocation13 + $0x90] sm:$0xff] }
 0x1bc   :  { %3349 = vmatpush3.bf16.msra.mxu1 %v3348_v40  ;;  %2748 = vmatprep.mubr.msk.f32.mxu1 %vm3915_vm1, %v3914_v1  ;;  %v1146_v50 = vld [vmem:[#allocation13 + $0xa0] sm:$0xff]  ;;  %v1134_v31 = vld [vmem:[#allocation13 + $0x70] sm:$0xff] }
 0x1bd   :  { %v573_v55 = vadd.f32 %v2278_v16, %v562_v49  ;;  %v607_v56 = vmul.f32 %v4397_v39, %v577_v47  ;;  %3350 = vmatprep.subr.bf16.mxu1 %v3913_v0  ;;  %v1145_v47 = vld [vmem:[#allocation13 + $0x98] sm:$0xff] }
 0x1be   :  { %v555_v59 = vpop.f32.mrb[18].mxu0  ;;  %v615_v60 = vld [vmem:[#allocation3] sm:$0xff]  ;;  %v3384_v49 = vpack.c.bf16 %v1145_v47, %v1144_v46 }
 0x1bf   :  { %v578_v63 = vmax.f32 %v573_v55, 0.0  ;;  %612 = vst [vmem:[#allocation3 + $0x11] sm:$0xff] %v607_v56  ;;  %v563_v2 = vadd.f32 %v555_v59, %v437_v14  ;;  %2790 = vmatmul.mubr.f32.vlgmr.msra.gmra.mrb[20].mxu0 %v615_v60  ;;  %2749 = vmatmul.mubr.f32.gmra.mrb[14].mxu1 %v607_v56  ;;  %v2709_v3 = vpop.f32.mrb[19].mxu0  ;;  %v3357_v14 = vpack.c.bf16 %v2304_v8, %v2303_v7  ;;  %v1122_v59 = vld [vmem:[#allocation13 + $0x10] sm:$0xff]  ;;  %v1123_v60 = vld [vmem:[#allocation13 + $0x18] sm:$0xff] }
 0x1c0   :  { %2792 = vmatprep.mubr.msk.f32.mxu0 %vm3915_vm1, %v3914_v1  ;;  %3352 = vmatpush3.bf16.msra.mxu1 %v3351_v54  ;;  %v1121_v54 = vld [vmem:[#allocation13 + $0x8] sm:$0xff]  ;;  %v3387_v55 = vpack.c.bf16 %v1147_v51, %v1146_v50  ;;  %v1152_v8 = vld [vmem:[#allocation13 + $0xd0] sm:$0xff] }
 0x1c1   :  { %v574_v5 = vadd.f32 %v2278_v16, %v563_v2  ;;  %v608_v6 = vmul.f32 %v4419_v61, %v578_v63  ;;  %2751 = vmatprep.mubr.msk.f32.mxu1 %vm3915_vm1, %v3914_v1  ;;  %3353 = vmatprep.subr.bf16.mxu1 %v3913_v0  ;;  %v2305_v16 = vld [vmem:[%s4820_s3 + $0x150] sm:$0xff]  ;;  %v3405_v56 = vpack.c.bf16 %v1121_v54, %v1120_v52  ;;  %v1150_v2 = vld [vmem:[#allocation13 + $0xc0] sm:$0xff]  ;;  %v1151_v3 = vld [vmem:[#allocation13 + $0xc8] sm:$0xff]  ;;  %s3918_s3 = smov [#allocation20]  }
 0x1c2   :  { %v616_v9 = vld [vmem:[#allocation3 + $0x8] sm:$0xff]  ;;  %3370 = vmatpush3.bf16.msra.mxu0 %v3369_v62  ;;  %v3360_v22 = vpack.c.bf16 %v2306_v17, %v2305_v16  ;;  %v3390_v62 = vpack.c.bf16 %v1149_v58, %v1148_v57  ;;  %v3408_v63 = vpack.c.bf16 %v1123_v60, %v1122_v59  ;;  %v1155_v16 = vld [vmem:[#allocation13 + $0xe8] sm:$0xff]  ;;  %v1128_v17 = vld [vmem:[#allocation13 + $0x40] sm:$0xff] }
 0x1c3   :  { %v579_v12 = vmax.f32 %v574_v5, 0.0  ;;  %613 = vst [vmem:[#allocation3 + $0x19] sm:$0xff] %v608_v6  ;;  %2793 = vmatmul.mubr.f32.gmra.mrb[22].mxu0 %v616_v9  ;;  %2752 = vmatmul.mubr.f32.gmra.mrb[16].mxu1 %v608_v6  ;;  %v838_v40 = vld [vmem:[#allocation3 + $0x2] sm:$0xff]  ;;  %v1125_v5 = vld [vmem:[#allocation13 + $0x28] sm:$0xff]  ;;  %v3393_v6 = vpack.c.bf16 %v1151_v3, %v1150_v2  ;;  %v1153_v9 = vld [vmem:[#allocation13 + $0xd8] sm:$0xff] }
 0x1c4   :  { %2795 = vmatprep.mubr.msk.f32.mxu0 %vm3915_vm1, %v3914_v1  ;;  %3355 = vmatpush3.bf16.msra.mxu1 %v3354_v4  ;;  %v1124_v4 = vld [vmem:[#allocation13 + $0x20] sm:$0xff] }
 0x1c5   :  { %v609_v15 = vmul.f32 %v4433_v13, %v579_v12  ;;  %2754 = vmatprep.mubr.msk.f32.mxu1 %vm3915_vm1, %v3914_v1  ;;  %3356 = vmatprep.subr.bf16.mxu1 %v3913_v0  ;;  %v3411_v7 = vpack.c.bf16 %v1125_v5, %v1124_v4  ;;  %v3396_v12 = vpack.c.bf16 %v1153_v9, %v1152_v8  ;;  %v4525_v2 = vld [vmem:[%s4821_s4] ss:$0 sm:$0xff]  ;;  %v4527_v4 = vld [vmem:[#allocation11] ss:$0 sm:$0xff] }
 0x1c6   :  { %v617_v19 = vld [vmem:[#allocation3 + $0x10] sm:$0xff]  ;;  %3371 = vmatprep.subr.bf16.mxu0 %v3913_v0 }
 0x1c7   :  { %614 = vst [vmem:[#allocation3 + $0x21] sm:$0x3] %v609_v15  ;;  %2796 = vmatmul.mubr.f32.gmra.mrb[24].mxu0 %v617_v19  ;;  %v839_v41 = vld [vmem:[#allocation3 + $0xa] sm:$0xff]  ;;  %v1154_v15 = vld [vmem:[#allocation13 + $0xe0] sm:$0xff] }
 0x1c8   :  { %2798 = vmatprep.mubr.msk.f32.mxu0 %vm3915_vm1, %v3914_v1  ;;  %3358 = vmatpush3.bf16.msra.mxu1 %v3357_v14  ;;  %v3414_v14 = vpack.c.bf16 %v1127_v11, %v1126_v10  ;;  %v3399_v19 = vpack.c.bf16 %v1155_v16, %v1154_v15 }
 0x1c9   :  { %3359 = vmatprep.subr.bf16.mxu1 %v3913_v0  ;;  %3373 = vmatpush3.bf16.msra.mxu0 %v3372_v18  ;;  %v1129_v18 = vld [vmem:[#allocation13 + $0x48] sm:$0xff] }
 0x1ca   :  { %v618_v27 = vld [vmem:[#allocation3 + $0x18] sm:$0xff]  ;;  %3374 = vmatprep.subr.bf16.mxu0 %v3913_v0  ;;  %v3417_v20 = vpack.c.bf16 %v1129_v18, %v1128_v17 }
 0x1cb   :  { %2799 = vmatmul.mubr.f32.gmra.mrb[26].mxu0 %v618_v27  ;;  %v3420_v27 = vpack.c.bf16 %v1131_v25, %v1130_v24  ;;  %v1344_v17 = vld [vmem:[#allocation13 + $0x100] sm:$0xff]  ;;  %v1345_v18 = vld [vmem:[#allocation13 + $0x108] sm:$0xff] }
 0x1cc   :  { %2801 = vmatprep.mubr.msk.f32.mxu0 %vm3915_vm1, %v3914_v1  ;;  %3361 = vmatpush3.bf16.msra.mxu1 %v3360_v22  ;;  %v1157_v22 = vld [vmem:[#allocation13 + $0xf8] sm:$0xff]  ;;  %v3429_v25 = vpack.c.bf16 %v1345_v18, %v1344_v17  ;;  %v1356_v17 = vld [vmem:[#allocation13 + $0x160] sm:$0xff]  ;;  %v1357_v18 = vld [vmem:[#allocation13 + $0x168] sm:$0xff] }
 0x1cd   :  { %3362 = vmatprep.subr.bf16.mxu1 %v3913_v0  ;;  %3376 = vmatpush3.bf16.msra.mxu0 %v3375_v26  ;;  %v3402_v26 = vpack.c.bf16 %v1157_v22, %v1156_v21 }
 0x1ce   :  { %v640_v34 = vld [vmem:[#allocation3 + $0x21] sm:$0x3]  ;;  %3377 = vmatprep.subr.bf16.mxu0 %v3913_v0 }
 0x1cf   :  { %v619_v35 = vld [vmem:[#allocation3 + $0x20] sm:$0x3]  ;;  %2755 = vmatmul.mubr.f32.gmra.mrb[18].mxu1 %v640_v34 }
 0x1d0   :  { %2802 = vmatmul.mubr.f32.gmra.mrb[28].mxu0 %v619_v35  ;;  %3364 = vmatpush3.bf16.msra.mxu1 %v3363_v30  ;;  %v841_v42 = vld [vmem:[#allocation3 + $0x1a] sm:$0xff]  ;;  %v3423_v30 = vpack.c.bf16 %v1133_v29, %v1132_v28 }
 0x1d1   :  { %2836 = vmatprep.mubr.msk.f32.mxu1 %vm3915_vm1, %v3914_v1  ;;  %3365 = vmatprep.subr.bf16.mxu1 %v3913_v0 }
 0x1d2   :  { %3379 = vmatpush3.bf16.msra.mxu0 %v3378_v33  ;;  %2867 = vmatprep.mubr.msk.f32.mxu0 %vm3915_vm1, %v3914_v1  ;;  %v3426_v33 = vpack.c.bf16 %v1135_v32, %v1134_v31  ;;  %v1346_v31 = vld [vmem:[#allocation13 + $0x110] sm:$0xff]  ;;  %v1347_v32 = vld [vmem:[#allocation13 + $0x118] sm:$0xff] }
 0x1d3   :  { %3404 = vmatprep.subr.bf16.mxu0 %v3913_v0 }
 0x1d4   :  { %3367 = vmatpush3.bf16.msra.mxu1 %v3366_v36 }
 0x1d5   :  { %2868 = vmatmul.mubr.msk.f32.vlgmr.msra.gmra.mrb[30].mxu0 %vm190_vm2, %v4199_v37  ;;  %3380 = vmatprep.subr.bf16.mxu1 %v3913_v0  ;;  %v840_v37 = vld [vmem:[#allocation3 + $0x12] sm:$0xff] }
 0x1d6   :  { %2870 = vmatprep.mubr.msk.f32.mxu0 %vm3915_vm1, %v3914_v1  ;;  %3406 = vmatpush3.bf16.msra.mxu0 %v3405_v56 }
 0x1d7   :  { %2837 = vmatmul.mubr.f32.vlgmr.msra.gmra.mrb[20].mxu1 %v838_v40  ;;  %3407 = vmatprep.subr.bf16.mxu0 %v3913_v0 }
 0x1d8   :  { %2839 = vmatprep.mubr.msk.f32.mxu1 %vm3915_vm1, %v3914_v1 }
 0x1d9   :  { %2871 = vmatmul.mubr.msk.f32.gmra.mrb[32].mxu0 %vm190_vm2, %v4211_v43  ;;  %v975_v43 = vld [vmem:[#allocation2 + $0x21] sm:$0x3] }
 0x1da   :  { %2873 = vmatprep.mubr.msk.f32.mxu0 %vm3915_vm1, %v3914_v1  ;;  %3409 = vmatpush3.bf16.msra.mxu0 %v3408_v63 }
 0x1db   :  { %2840 = vmatmul.mubr.f32.gmra.mrb[22].mxu1 %v839_v41  ;;  %3410 = vmatprep.subr.bf16.mxu0 %v3913_v0 }
 0x1dc   :  { %2842 = vmatprep.mubr.msk.f32.mxu1 %vm3915_vm1, %v3914_v1 }
 0x1dd   :  { %2874 = vmatmul.mubr.msk.f32.gmra.mrb[34].mxu0 %vm190_vm2, %v4221_v48  ;;  %v842_v48 = vld [vmem:[#allocation3 + $0x22] sm:$0x3] }
 0x1de   :  { %2876 = vmatprep.mubr.msk.f32.mxu0 %vm3915_vm1, %v3914_v1  ;;  %3412 = vmatpush3.bf16.msra.mxu0 %v3411_v7 }
 0x1df   :  { %2843 = vmatmul.mubr.f32.gmra.mrb[24].mxu1 %v840_v37  ;;  %3413 = vmatprep.subr.bf16.mxu0 %v3913_v0 }
 0x1e0   :  { %2845 = vmatprep.mubr.msk.f32.mxu1 %vm3915_vm1, %v3914_v1 }
 0x1e1   :  { %2877 = vmatmul.mubr.msk.f32.gmra.mrb[36].mxu0 %vm190_vm2, %v4231_v53  ;;  %v1142_v53 = vld [vmem:[#allocation13 + $0x80] sm:$0xff] }
 0x1e2   :  { %2879 = vmatprep.mubr.msk.f32.mxu0 %vm3915_vm1, %v3914_v1  ;;  %v3381_v45 = vpack.c.bf16 %v1143_v44, %v1142_v53  ;;  %3415 = vmatpush3.bf16.msra.mxu0 %v3414_v14 }
 0x1e3   :  { %2846 = vmatmul.mubr.f32.gmra.mrb[26].mxu1 %v841_v42  ;;  %3416 = vmatprep.subr.bf16.mxu0 %v3913_v0 }
 0x1e4   :  { %2848 = vmatprep.mubr.msk.f32.mxu1 %vm3915_vm1, %v3914_v1  ;;  %3382 = vmatpush3.bf16.msra.mxu1 %v3381_v45 }
 0x1e5   :  { %2880 = vmatmul.mubr.msk.f32.gmra.mrb[38].mxu0 %vm190_vm2, %v975_v43  ;;  %3383 = vmatprep.subr.bf16.mxu1 %v3913_v0 }
 0x1e6   :  { %2961 = vmatprep.mubr.msk.f32.mxu0 %vm3915_vm1, %v3914_v1  ;;  %3418 = vmatpush3.bf16.msra.mxu0 %v3417_v20 }
 0x1e7   :  { %2849 = vmatmul.mubr.f32.gmra.mrb[28].mxu1 %v842_v48  ;;  %3419 = vmatprep.subr.bf16.mxu0 %v3913_v0 }
 0x1e8   :  { %2914 = vmatprep.mubr.msk.f32.mxu1 %vm3915_vm1, %v3914_v1  ;;  %3385 = vmatpush3.bf16.msra.mxu1 %v3384_v49 }
 0x1e9   :  { %3386 = vmatprep.subr.bf16.mxu1 %v3913_v0 }
 0x1ea   :  { %3421 = vmatpush3.bf16.msra.mxu0 %v3420_v27 }
 0x1eb   :  { %3422 = vmatprep.subr.bf16.mxu0 %v3913_v0 }
 0x1ec   :  { %3388 = vmatpush3.bf16.msra.mxu1 %v3387_v55 }
 0x1ed   :  { %3389 = vmatprep.subr.bf16.mxu1 %v3913_v0 }
 0x1ee   :  { %3424 = vmatpush3.bf16.msra.mxu0 %v3423_v30 }
 0x1ef   :  { %3425 = vmatprep.subr.bf16.mxu0 %v3913_v0 }
 0x1f0   :  { %3391 = vmatpush3.bf16.msra.mxu1 %v3390_v62 }
 0x1f1   :  { %3392 = vmatprep.subr.bf16.mxu1 %v3913_v0 }
 0x1f2   :  { %3427 = vmatpush3.bf16.msra.mxu0 %v3426_v33 }
 0x1f3   :  { %3452 = vmatprep.subr.bf16.mxu0 %v3913_v0 }
 0x1f4   :  { %3394 = vmatpush3.bf16.msra.mxu1 %v3393_v6 }
 0x1f5   :  { %3395 = vmatprep.subr.bf16.mxu1 %v3913_v0 }
 0x1f8   :  { %3397 = vmatpush3.bf16.msra.mxu1 %v3396_v12 }
 0x1f9   :  { %3398 = vmatprep.subr.bf16.mxu1 %v3913_v0 }
 0x1fc   :  { %3400 = vmatpush3.bf16.msra.mxu1 %v3399_v19 }
 0x1fd   :  { %3401 = vmatprep.subr.bf16.mxu1 %v3913_v0 }
 0x200   :  { %3403 = vmatpush3.bf16.msra.mxu1 %v3402_v26 }
 0x201   :  { %3428 = vmatprep.subr.bf16.mxu1 %v3913_v0 }
 0x28a   :  { %v724_v34 = vpop.f32.mrb[10].mxu1 }
 0x28b   :  { %v2744_v35 = vpop.f32.mrb[11].mxu1 }
 0x28e   :  { %v729_v36 = vpop.f32.mrb[12].mxu1 }
 0x28f   :  { %v2747_v40 = vpop.f32.mrb[13].mxu1 }
 0x292   :  { %v814_v41 = vpop.f32.mrb[20].mxu0  ;;  %v734_v37 = vpop.f32.mrb[14].mxu1 }
 0x293   :  { %v815_v43 = vadd.f32 %v814_v41, %v724_v34  ;;  %v2791_v42 = vpop.f32.mrb[21].mxu0  ;;  %v2750_v48 = vpop.f32.mrb[15].mxu1  ;;  %v3432_v41 = vpack.c.bf16 %v1347_v32, %v1346_v31 }
 0x296   :  { %v819_v53 = vpop.f32.mrb[22].mxu0  ;;  %v739_v44 = vpop.f32.mrb[16].mxu1 }
 0x297   :  { %v820_v45 = vadd.f32 %v819_v53, %v729_v36  ;;  %v2794_v46 = vpop.f32.mrb[23].mxu0  ;;  %v2753_v47 = vpop.f32.mrb[17].mxu1 }
 0x29a   :  { %v824_v49 = vpop.f32.mrb[24].mxu0 }
 0x29b   :  { %v825_v50 = vadd.f32 %v824_v49, %v734_v37  ;;  %v2797_v51 = vpop.f32.mrb[25].mxu0 }
 0x29e   :  { %v829_v52 = vpop.f32.mrb[26].mxu0 }
 0x29f   :  { %v830_v54 = vadd.f32 %v829_v52, %v739_v44  ;;  %v2800_v55 = vpop.f32.mrb[27].mxu0  ;;  %v1348_v44 = vld [vmem:[#allocation13 + $0x120] sm:$0xff] }
 0x2a2   :  { %v744_v56 = vpop.f32.mrb[18].mxu1 }
 0x2a3   :  { %v834_v57 = vpop.f32.mrb[28].mxu0  ;;  %v2756_v59 = vpop.f32.mrb[19].mxu1 }
 0x2a4   :  { %v4520_v58 = vadd.f32 %v834_v57, %v744_v56  ;;  %v2803_v60 = vpop.f32.mrb[29].mxu0  ;;  %v1350_v59 = vld [vmem:[#allocation13 + $0x130] sm:$0xff] }
 0x2a5   :  { %v1351_v60 = vld [vmem:[#allocation13 + $0x138] sm:$0xff] }
 0x2a8   :  { %v1071_v62 = vpop.f32.mrb[30].mxu0 }
 0x2a9   :  { %v2869_v63 = vpop.f32.mrb[31].mxu0  ;;  %v1072_v10 = vadd.f32 %v4527_v4, %v1071_v62 }
 0x2aa   :  { %v926_v3 = vpop.f32.mrb[20].mxu1 }
 0x2ab   :  { %v950_v5 = vadd.f32 %v926_v3, %v815_v43  ;;  %v2838_v6 = vpop.f32.mrb[21].mxu1 }
 0x2ac   :  { %v1076_v7 = vpop.f32.mrb[32].mxu0 }
 0x2ad   :  { %v2872_v8 = vpop.f32.mrb[33].mxu0  ;;  %v961_v9 = vadd.f32 %v4525_v2, %v950_v5  ;;  %v1077_v22 = vadd.f32 %v4527_v4, %v1076_v7 }
 0x2ae   :  { %v931_v11 = vpop.f32.mrb[22].mxu1  ;;  %v1353_v8 = vld [vmem:[#allocation13 + $0x148] sm:$0xff] }
 0x2af   :  { %v966_v12 = vmax.f32 %v961_v9, 0.0  ;;  %v951_v14 = vadd.f32 %v931_v11, %v820_v45  ;;  %v2841_v15 = vpop.f32.mrb[23].mxu1  ;;  %v1349_v45 = vld [vmem:[#allocation13 + $0x128] sm:$0xff] }
 0x2b0   :  { %v1081_v16 = vpop.f32.mrb[34].mxu0  ;;  %v3435_v52 = vpack.c.bf16 %v1349_v45, %v1348_v44 }
 0x2b1   :  { %v2875_v19 = vpop.f32.mrb[35].mxu0  ;;  %v1095_v20 = vadd.f32 %v1072_v10, %v966_v12  ;;  %v962_v21 = vadd.f32 %v4525_v2, %v951_v14  ;;  %v1082_v36 = vadd.f32 %v4527_v4, %v1081_v16  ;;  %v1354_v12 = vld [vmem:[#allocation13 + $0x150] sm:$0xff]  ;;  %v1355_v14 = vld [vmem:[#allocation13 + $0x158] sm:$0xff] }
 0x2b2   :  { %v936_v24 = vpop.f32.mrb[24].mxu1  ;;  %v3444_v16 = vpack.c.bf16 %v1355_v14, %v1354_v12  ;;  %v1522_v14 = vld [vmem:[#allocation16 + $0xf0] sm:$0xff] }
 0x2b3   :  { %v4534_v26 = vmul.f32 %v1095_v20, %v4386_v23  ;;  %v967_v27 = vmax.f32 %v962_v21, 0.0  ;;  %v952_v28 = vadd.f32 %v936_v24, %v825_v50  ;;  %v2844_v29 = vpop.f32.mrb[25].mxu1  ;;  %v3447_v20 = vpack.c.bf16 %v1357_v18, %v1356_v17  ;;  %v1358_v21 = vld [vmem:[#allocation13 + $0x170] sm:$0xff]  ;;  %v1497_v17 = vld [vmem:[#allocation16 + $0x58] sm:$0xff] }
 0x2b4   :  { %v1086_v30 = vpop.f32.mrb[36].mxu0 }
 0x2b5   :  { %v2878_v33 = vpop.f32.mrb[37].mxu0  ;;  %1105 = vst [vmem:[#allocation4 + $0x1] sm:$0xff] %v4534_v26  ;;  %1110 = vst [vmem:[#allocation20] sm:$0xff] %v4534_v26  ;;  %v963_v34 = vadd.f32 %v4525_v2, %v952_v28  ;;  %v1096_v35 = vadd.f32 %v1077_v22, %v967_v27  ;;  %2915 = vmatmul.mubr.f32.vlgmr.msra.gmra.mrb[30].mxu1 %v4534_v26  ;;  %v1087_v50 = vadd.f32 %v4527_v4, %v1086_v30  ;;  %v1359_v22 = vld [vmem:[#allocation13 + $0x178] sm:$0xff] }
 0x2b6   :  { %v941_v40 = vpop.f32.mrb[26].mxu1  ;;  %3430 = vmatpush3.bf16.msra.mxu1 %v3429_v25  ;;  %2917 = vmatprep.mubr.msk.f32.mxu1 %vm3915_vm1, %v3914_v1  ;;  %v3450_v27 = vpack.c.bf16 %v1359_v22, %v1358_v21  ;;  %v1508_v33 = vld [vmem:[#allocation16 + $0x80] sm:$0xff]  ;;  %v1499_v21 = vld [vmem:[#allocation16 + $0x68] sm:$0xff] }
 0x2b7   :  { %v968_v37 = vmax.f32 %v963_v34, 0.0  ;;  %v4544_v43 = vmul.f32 %v1096_v35, %v4395_v38  ;;  %v953_v42 = vadd.f32 %v941_v40, %v830_v54  ;;  %v2847_v48 = vpop.f32.mrb[27].mxu1  ;;  %3431 = vmatprep.subr.bf16.mxu1 %v3913_v0  ;;  %v1509_v34 = vld [vmem:[#allocation16 + $0x88] sm:$0xff]  ;;  %v1511_v40 = vld [vmem:[#allocation16 + $0x98] sm:$0xff] }
 0x2b8   :  { %v1091_v53 = vpop.f32.mrb[38].mxu0  ;;  %v3453_v35 = vpack.c.bf16 %v1509_v34, %v1508_v33  ;;  %v1486_v48 = vld [vmem:[#allocation16] sm:$0xff] }
 0x2b9   :  { %v2881_v46 = vpop.f32.mrb[39].mxu0  ;;  %1106 = vst [vmem:[#allocation4 + $0x9] sm:$0xff] %v4544_v43  ;;  %1111 = vst [vmem:[#allocation20 + $0x8] sm:$0xff] %v4544_v43  ;;  %v964_v47 = vadd.f32 %v4525_v2, %v953_v42  ;;  %v1097_v49 = vadd.f32 %v1082_v36, %v968_v37  ;;  %2918 = vmatmul.mubr.f32.gmra.mrb[32].mxu1 %v4544_v43  ;;  %v1092_v5 = vadd.f32 %v4527_v4, %v1091_v53  ;;  %v1510_v36 = vld [vmem:[#allocation16 + $0x90] sm:$0xff]  ;;  %v1512_v37 = vld [vmem:[#allocation16 + $0xa0] sm:$0xff] }
 0x2ba   :  { %v946_v51 = vpop.f32.mrb[28].mxu1  ;;  %3433 = vmatpush3.bf16.msra.mxu1 %v3432_v41  ;;  %2920 = vmatprep.mubr.msk.f32.mxu1 %vm3915_vm1, %v3914_v1  ;;  %v3456_v41 = vpack.c.bf16 %v1511_v40, %v1510_v36  ;;  %v1513_v42 = vld [vmem:[#allocation16 + $0xa8] sm:$0xff]  ;;  %v1514_v46 = vld [vmem:[#allocation16 + $0xb0] sm:$0xff] }
 0x2bb   :  { %v969_v54 = vmax.f32 %v964_v47, 0.0  ;;  %v4555_v55 = vmul.f32 %v1097_v49, %v4397_v39  ;;  %v954_v56 = vadd.f32 %v946_v51, %v4520_v58  ;;  %v2850_v57 = vpop.f32.mrb[29].mxu1  ;;  %3434 = vmatprep.subr.bf16.mxu1 %v3913_v0  ;;  %v3438_v58 = vpack.c.bf16 %v1351_v60, %v1350_v59  ;;  %v1487_v53 = vld [vmem:[#allocation16 + $0x8] sm:$0xff]  ;;  %v1515_v47 = vld [vmem:[#allocation16 + $0xb8] sm:$0xff]  ;;  %v1488_v49 = vld [vmem:[#allocation16 + $0x10] sm:$0xff] }
 0x2bc   :  { %v1115_v62 = vld [vmem:[#allocation4] sm:$0xff]  ;;  %v3459_v44 = vpack.c.bf16 %v1513_v42, %v1512_v37  ;;  %v3477_v45 = vpack.c.bf16 %v1487_v53, %v1486_v48  ;;  %v3462_v51 = vpack.c.bf16 %v1515_v47, %v1514_v46  ;;  %v1490_v57 = vld [vmem:[#allocation16 + $0x20] sm:$0xff]  ;;  %v1491_v59 = vld [vmem:[#allocation16 + $0x28] sm:$0xff] }
 0x2bd   :  { %1107 = vst [vmem:[#allocation4 + $0x11] sm:$0xff] %v4555_v55  ;;  %1112 = vst [vmem:[#allocation20 + $0xe] sm:$0xfc] %v4555_v55  ;;  %v965_v63 = vadd.f32 %v4525_v2, %v954_v56  ;;  %v1098_v3 = vadd.f32 %v1087_v50, %v969_v54  ;;  %2962 = vmatmul.mubr.f32.vlgmr.msra.gmra.mrb[40].mxu0 %v1115_v62  ;;  %2921 = vmatmul.mubr.f32.gmra.mrb[34].mxu1 %v4555_v55  ;;  %v1352_v2 = vld [vmem:[#allocation13 + $0x140] sm:$0xff]  ;;  %v1517_v56 = vld [vmem:[#allocation16 + $0xc8] sm:$0xff] }
 0x2be   :  { %2964 = vmatprep.mubr.msk.f32.mxu0 %vm3915_vm1, %v3914_v1  ;;  %3436 = vmatpush3.bf16.msra.mxu1 %v3435_v52  ;;  %v3441_v10 = vpack.c.bf16 %v1353_v8, %v1352_v2  ;;  %v1489_v50 = vld [vmem:[#allocation16 + $0x18] sm:$0xff]  ;;  %v1516_v54 = vld [vmem:[#allocation16 + $0xc0] sm:$0xff]  ;;  %v3483_v62 = vpack.c.bf16 %v1491_v59, %v1490_v57 }
 0x2bf   :  { %v970_v6 = vmax.f32 %v965_v63, 0.0  ;;  %v4567_v7 = vmul.f32 %v1098_v3, %v4419_v61  ;;  %2923 = vmatprep.mubr.msk.f32.mxu1 %vm3915_vm1, %v3914_v1  ;;  %3437 = vmatprep.subr.bf16.mxu1 %v3913_v0  ;;  %v3480_v52 = vpack.c.bf16 %v1489_v50, %v1488_v49  ;;  %v3465_v60 = vpack.c.bf16 %v1517_v56, %v1516_v54  ;;  %v1492_v63 = vld [vmem:[#allocation16 + $0x30] sm:$0xff]  ;;  %v1493_v3 = vld [vmem:[#allocation16 + $0x38] sm:$0xff]  ;;  %v1520_v8 = vld [vmem:[#allocation16 + $0xe0] sm:$0xff] }
 0x2c0   :  { %v1116_v9 = vld [vmem:[#allocation4 + $0x8] sm:$0xff]  ;;  %3454 = vmatpush3.bf16.msra.mxu0 %v3453_v35 }
 0x2c1   :  { %1108 = vst [vmem:[#allocation4 + $0x19] sm:$0xff] %v4567_v7  ;;  %1113 = vst [vmem:[#allocation20 + $0x16] sm:$0xff] %v4567_v7  ;;  %v1099_v4 = vadd.f32 %v1092_v5, %v970_v6  ;;  %2965 = vmatmul.mubr.f32.gmra.mrb[42].mxu0 %v1116_v9  ;;  %2924 = vmatmul.mubr.f32.gmra.mrb[36].mxu1 %v4567_v7  ;;  %v1338_v28 = vld [vmem:[#allocation4 + $0x2] sm:$0xff]  ;;  %v3486_v5 = vpack.c.bf16 %v1493_v3, %v1492_v63  ;;  %v1521_v9 = vld [vmem:[#allocation16 + $0xe8] sm:$0xff] }
 0x2c2   :  { %2967 = vmatprep.mubr.msk.f32.mxu0 %vm3915_vm1, %v3914_v1  ;;  %3439 = vmatpush3.bf16.msra.mxu1 %v3438_v58  ;;  %v1518_v58 = vld [vmem:[#allocation16 + $0xd0] sm:$0xff]  ;;  %v1519_v6 = vld [vmem:[#allocation16 + $0xd8] sm:$0xff]  ;;  %v1710_v3 = vld [vmem:[#allocation16 + $0x100] sm:$0xff] }
 0x2c3   :  { %v1104_v11 = vmul.f32 %v1099_v4, %v4433_v13  ;;  %2926 = vmatprep.mubr.msk.f32.mxu1 %vm3915_vm1, %v3914_v1  ;;  %3440 = vmatprep.subr.bf16.mxu1 %v3913_v0  ;;  %v3468_v2 = vpack.c.bf16 %v1519_v6, %v1518_v58  ;;  %v1494_v4 = vld [vmem:[#allocation16 + $0x40] sm:$0xff]  ;;  %v2318_v57 = vld [vmem:[#allocation14] ss:$0 sm:$0xff] }
 0x2c4   :  { %v1117_v15 = vld [vmem:[#allocation4 + $0x10] sm:$0xff]  ;;  %3455 = vmatprep.subr.bf16.mxu0 %v3913_v0 }
 0x2c5   :  { %1109 = vst [vmem:[#allocation4 + $0x21] sm:$0x3] %v1104_v11  ;;  %1114 = vst [vmem:[#allocation20 + $0x1e] sm:$0x3] %v1104_v11  ;;  %2968 = vmatmul.mubr.f32.gmra.mrb[44].mxu0 %v1117_v15  ;;  %v1339_v29 = vld [vmem:[#allocation4 + $0xa] sm:$0xff]  ;;  %v3471_v11 = vpack.c.bf16 %v1521_v9, %v1520_v8 }
 0x2c6   :  { %2970 = vmatprep.mubr.msk.f32.mxu0 %vm3915_vm1, %v3914_v1  ;;  %3442 = vmatpush3.bf16.msra.mxu1 %v3441_v10  ;;  %v1495_v10 = vld [vmem:[#allocation16 + $0x48] sm:$0xff]  ;;  %v1523_v15 = vld [vmem:[#allocation16 + $0xf8] sm:$0xff] }
 0x2c7   :  { %3443 = vmatprep.subr.bf16.mxu1 %v3913_v0  ;;  %3457 = vmatpush3.bf16.msra.mxu0 %v3456_v41  ;;  %v3489_v12 = vpack.c.bf16 %v1495_v10, %v1494_v4  ;;  %v3474_v18 = vpack.c.bf16 %v1523_v15, %v1522_v14 }
 0x2c8   :  { %v1118_v19 = vld [vmem:[#allocation4 + $0x18] sm:$0xff]  ;;  %3458 = vmatprep.subr.bf16.mxu0 %v3913_v0 }
 0x2c9   :  { %2971 = vmatmul.mubr.f32.gmra.mrb[46].mxu0 %v1118_v19  ;;  %v1340_v30 = vld [vmem:[#allocation4 + $0x12] sm:$0xff] }
 0x2ca   :  { %2973 = vmatprep.mubr.msk.f32.mxu0 %vm3915_vm1, %v3914_v1  ;;  %3445 = vmatpush3.bf16.msra.mxu1 %v3444_v16  ;;  %v1496_v16 = vld [vmem:[#allocation16 + $0x50] sm:$0xff] }
 0x2cb   :  { %3446 = vmatprep.subr.bf16.mxu1 %v3913_v0  ;;  %3460 = vmatpush3.bf16.msra.mxu0 %v3459_v44  ;;  %v3492_v19 = vpack.c.bf16 %v1497_v17, %v1496_v16 }
 0x2cc   :  { %v1140_v24 = vld [vmem:[#allocation4 + $0x21] sm:$0x3]  ;;  %3461 = vmatprep.subr.bf16.mxu0 %v3913_v0 }
 0x2cd   :  { %v1119_v25 = vld [vmem:[#allocation4 + $0x20] sm:$0x3]  ;;  %2927 = vmatmul.mubr.f32.gmra.mrb[38].mxu1 %v1140_v24  ;;  %v1342_v32 = vld [vmem:[#allocation4 + $0x22] sm:$0x3] }
 0x2ce   :  { %2974 = vmatmul.mubr.f32.gmra.mrb[48].mxu0 %v1119_v25  ;;  %3448 = vmatpush3.bf16.msra.mxu1 %v3447_v20  ;;  %v1341_v31 = vld [vmem:[#allocation4 + $0x1a] sm:$0xff]  ;;  %v1498_v20 = vld [vmem:[#allocation16 + $0x60] sm:$0xff]  ;;  %v1501_v25 = vld [vmem:[#allocation16 + $0x78] sm:$0xff] }
 0x2cf   :  { %3008 = vmatprep.mubr.msk.f32.mxu1 %vm3915_vm1, %v3914_v1  ;;  %3449 = vmatprep.subr.bf16.mxu1 %v3913_v0  ;;  %v3495_v22 = vpack.c.bf16 %v1499_v21, %v1498_v20  ;;  %v1500_v24 = vld [vmem:[#allocation16 + $0x70] sm:$0xff]  ;;  %v1715_v21 = vld [vmem:[#allocation16 + $0x128] sm:$0xff] }
 0x2d0   :  { %3055 = vmatprep.mubr.msk.f32.mxu0 %vm3915_vm1, %v3914_v1  ;;  %3463 = vmatpush3.bf16.msra.mxu0 %v3462_v51 }
 0x2d1   :  { %3464 = vmatprep.subr.bf16.mxu0 %v3913_v0 }
 0x2d2   :  { %3451 = vmatpush3.bf16.msra.mxu1 %v3450_v27  ;;  %v3498_v27 = vpack.c.bf16 %v1501_v25, %v1500_v24 }
 0x2d3   :  { %3476 = vmatprep.subr.bf16.mxu1 %v3913_v0 }
 0x2d4   :  { %3466 = vmatpush3.bf16.msra.mxu0 %v3465_v60 }
 0x2d5   :  { %3009 = vmatmul.mubr.f32.vlgmr.msra.gmra.mrb[40].mxu1 %v1338_v28  ;;  %3467 = vmatprep.subr.bf16.mxu0 %v3913_v0 }
 0x2d6   :  { %3011 = vmatprep.mubr.msk.f32.mxu1 %vm3915_vm1, %v3914_v1  ;;  %3478 = vmatpush3.bf16.msra.mxu1 %v3477_v45 }
 0x2d7   :  { %3479 = vmatprep.subr.bf16.mxu1 %v3913_v0 }
 0x2d8   :  { %3469 = vmatpush3.bf16.msra.mxu0 %v3468_v2 }
 0x2d9   :  { %3012 = vmatmul.mubr.f32.gmra.mrb[42].mxu1 %v1339_v29  ;;  %3470 = vmatprep.subr.bf16.mxu0 %v3913_v0 }
 0x2da   :  { %3014 = vmatprep.mubr.msk.f32.mxu1 %vm3915_vm1, %v3914_v1  ;;  %3481 = vmatpush3.bf16.msra.mxu1 %v3480_v52 }
 0x2db   :  { %3482 = vmatprep.subr.bf16.mxu1 %v3913_v0 }
 0x2dc   :  { %3472 = vmatpush3.bf16.msra.mxu0 %v3471_v11  ;;  %v1712_v11 = vld [vmem:[#allocation16 + $0x110] sm:$0xff] }
 0x2dd   :  { %3015 = vmatmul.mubr.f32.gmra.mrb[44].mxu1 %v1340_v30  ;;  %3473 = vmatprep.subr.bf16.mxu0 %v3913_v0 }
 0x2de   :  { %3017 = vmatprep.mubr.msk.f32.mxu1 %vm3915_vm1, %v3914_v1  ;;  %3484 = vmatpush3.bf16.msra.mxu1 %v3483_v62 }
 0x2df   :  { %3485 = vmatprep.subr.bf16.mxu1 %v3913_v0 }
 0x2e0   :  { %3475 = vmatpush3.bf16.msra.mxu0 %v3474_v18 }
 0x2e1   :  { %3018 = vmatmul.mubr.f32.gmra.mrb[46].mxu1 %v1341_v31  ;;  %3500 = vmatprep.subr.bf16.mxu0 %v3913_v0 }
 0x2e2   :  { %3020 = vmatprep.mubr.msk.f32.mxu1 %vm3915_vm1, %v3914_v1  ;;  %3487 = vmatpush3.bf16.msra.mxu1 %v3486_v5  ;;  %v1711_v5 = vld [vmem:[#allocation16 + $0x108] sm:$0xff] }
 0x2e3   :  { %3488 = vmatprep.subr.bf16.mxu1 %v3913_v0  ;;  %v3501_v9 = vpack.c.bf16 %v1711_v5, %v1710_v3 }
 0x2e5   :  { %3021 = vmatmul.mubr.f32.gmra.mrb[48].mxu1 %v1342_v32 }
 0x2e6   :  { %3102 = vmatprep.mubr.msk.f32.mxu1 %vm3915_vm1, %v3914_v1  ;;  %3490 = vmatpush3.bf16.msra.mxu1 %v3489_v12  ;;  %v1713_v12 = vld [vmem:[#allocation16 + $0x118] sm:$0xff] }
 0x2e7   :  { %3491 = vmatprep.subr.bf16.mxu1 %v3913_v0  ;;  %v3504_v18 = vpack.c.bf16 %v1713_v12, %v1712_v11 }
 0x2ea   :  { %3493 = vmatpush3.bf16.msra.mxu1 %v3492_v19 }
 0x2eb   :  { %3494 = vmatprep.subr.bf16.mxu1 %v3913_v0 }
 0x2ee   :  { %3496 = vmatpush3.bf16.msra.mxu1 %v3495_v22 }
 0x2ef   :  { %3497 = vmatprep.subr.bf16.mxu1 %v3913_v0 }
 0x2f2   :  { %3499 = vmatpush3.bf16.msra.mxu1 %v3498_v27 }
 0x388   :  { %v1224_v28 = vpop.f32.mrb[30].mxu1 }
 0x389   :  { %v2916_v29 = vpop.f32.mrb[31].mxu1 }
 0x38c   :  { %v1229_v30 = vpop.f32.mrb[32].mxu1 }
 0x38d   :  { %v2919_v31 = vpop.f32.mrb[33].mxu1 }
 0x38e   :  { %v1717_v31 = vld [vmem:[#allocation16 + $0x138] sm:$0xff] }
 0x390   :  { %v1314_v32 = vpop.f32.mrb[40].mxu0  ;;  %v1234_v33 = vpop.f32.mrb[34].mxu1 }
 0x391   :  { %v1315_v34 = vadd.f32 %v1314_v32, %v1224_v28  ;;  %v2963_v35 = vpop.f32.mrb[41].mxu0  ;;  %v2922_v36 = vpop.f32.mrb[35].mxu1 }
 0x394   :  { %v1319_v40 = vpop.f32.mrb[42].mxu0  ;;  %v1239_v41 = vpop.f32.mrb[36].mxu1 }
 0x395   :  { %v1320_v37 = vadd.f32 %v1319_v40, %v1229_v30  ;;  %v2966_v42 = vpop.f32.mrb[43].mxu0  ;;  %v2925_v48 = vpop.f32.mrb[37].mxu1 }
 0x396   :  { %v1719_v42 = vld [vmem:[#allocation16 + $0x148] sm:$0xff] }
 0x398   :  { %v1324_v53 = vpop.f32.mrb[44].mxu0 }
 0x399   :  { %v1325_v44 = vadd.f32 %v1324_v53, %v1234_v33  ;;  %v2969_v45 = vpop.f32.mrb[45].mxu0 }
 0x39a   :  { %v1720_v45 = vld [vmem:[#allocation16 + $0x150] sm:$0xff] }
 0x39c   :  { %v1329_v46 = vpop.f32.mrb[46].mxu0 }
 0x39d   :  { %v1330_v47 = vadd.f32 %v1329_v46, %v1239_v41  ;;  %v2972_v49 = vpop.f32.mrb[47].mxu0  ;;  %v1721_v46 = vld [vmem:[#allocation16 + $0x158] sm:$0xff] }
 0x39e   :  { %v3516_v49 = vpack.c.bf16 %v1721_v46, %v1720_v45 }
 0x3a0   :  { %v1244_v50 = vpop.f32.mrb[38].mxu1 }
 0x3a1   :  { %v1334_v51 = vpop.f32.mrb[48].mxu0  ;;  %v2928_v54 = vpop.f32.mrb[39].mxu1 }
 0x3a2   :  { %v1335_v52 = vadd.f32 %v1334_v51, %v1244_v50  ;;  %v2975_v56 = vpop.f32.mrb[49].mxu0  ;;  %v1722_v50 = vld [vmem:[#allocation16 + $0x160] sm:$0xff]  ;;  %v1723_v51 = vld [vmem:[#allocation16 + $0x168] sm:$0xff]  ;;  %v1724_v54 = vld [vmem:[#allocation16 + $0x170] sm:$0xff] }
 0x3a3   :  { %v1725_v56 = vld [vmem:[#allocation16 + $0x178] sm:$0xff] }
 0x3a8   :  { %v1426_v59 = vpop.f32.mrb[40].mxu1 }
 0x3a9   :  { %v1450_v60 = vadd.f32 %v1426_v59, %v1315_v34  ;;  %v3010_v62 = vpop.f32.mrb[41].mxu1 }
 0x3ab   :  { %v1461_v63 = vadd.f32 %v2318_v57, %v1450_v60  ;;  %v3522_v60 = vpack.c.bf16 %v1725_v56, %v1724_v54 }
 0x3ac   :  { %v1431_v58 = vpop.f32.mrb[42].mxu1 }
 0x3ad   :  { %v1466_v6 = vmax.f32 %v1461_v63, 0.0  ;;  %v1451_v2 = vadd.f32 %v1431_v58, %v1320_v37  ;;  %v3013_v8 = vpop.f32.mrb[43].mxu1  ;;  %v1718_v37 = vld [vmem:[#allocation16 + $0x140] sm:$0xff] }
 0x3ae   :  { %v1852_v58 = vld [vmem:[%s4830_s13] sm:$0xff] }
 0x3af   :  { %v1471_v4 = vmul.f32 %v1466_v6, %v4386_v23  ;;  %v1462_v10 = vadd.f32 %v2318_v57, %v1451_v2  ;;  %v1714_v23 = vld [vmem:[#allocation16 + $0x120] sm:$0xff] }
 0x3b0   :  { %v1436_v14 = vpop.f32.mrb[44].mxu1  ;;  %v3507_v28 = vpack.c.bf16 %v1715_v21, %v1714_v23  ;;  %v1940_v6 = vld [vmem:[#allocation19] sm:$0xff] }
 0x3b1   :  { %1476 = vst [vmem:[#allocation3 + $0x1] sm:$0xff] %v1471_v4  ;;  %v1467_v15 = vmax.f32 %v1462_v10, 0.0  ;;  %v1452_v16 = vadd.f32 %v1436_v14, %v1325_v44  ;;  %v3016_v17 = vpop.f32.mrb[45].mxu1  ;;  %3056 = vmatmul.mubr.f32.vlgmr.msra.gmra.mrb[50].mxu0 %v1471_v4  ;;  %v3513_v44 = vpack.c.bf16 %v1719_v42, %v1718_v37 }
 0x3b2   :  { %3502 = vmatpush3.bf16.msra.mxu0 %v3501_v9  ;;  %3058 = vmatprep.mubr.msk.f32.mxu0 %vm3915_vm1, %v3914_v1 }
 0x3b3   :  { %v1472_v19 = vmul.f32 %v1467_v15, %v4395_v38  ;;  %v1463_v20 = vadd.f32 %v2318_v57, %v1452_v16  ;;  %3503 = vmatprep.subr.bf16.mxu0 %v3913_v0  ;;  %v1716_v38 = vld [vmem:[#allocation16 + $0x130] sm:$0xff] }
 0x3b4   :  { %v1441_v22 = vpop.f32.mrb[46].mxu1  ;;  %v3510_v40 = vpack.c.bf16 %v1717_v31, %v1716_v38  ;;  %v2319_v31 = vld [vmem:[#allocation17] ss:$0 sm:$0xff] }
 0x3b5   :  { %1477 = vst [vmem:[#allocation3 + $0x9] sm:$0xff] %v1472_v19  ;;  %v1468_v24 = vmax.f32 %v1463_v20, 0.0  ;;  %v1453_v25 = vadd.f32 %v1441_v22, %v1330_v47  ;;  %v3019_v27 = vpop.f32.mrb[47].mxu1  ;;  %3059 = vmatmul.mubr.f32.gmra.mrb[52].mxu0 %v1472_v19 }
 0x3b6   :  { %3505 = vmatpush3.bf16.msra.mxu0 %v3504_v18  ;;  %3061 = vmatprep.mubr.msk.f32.mxu0 %vm3915_vm1, %v3914_v1 }
 0x3b7   :  { %v1473_v29 = vmul.f32 %v1468_v24, %v4397_v39  ;;  %v1464_v30 = vadd.f32 %v2318_v57, %v1453_v25  ;;  %3506 = vmatprep.subr.bf16.mxu0 %v3913_v0 }
 0x3b8   :  { %v1446_v32 = vpop.f32.mrb[48].mxu1  ;;  %v1481_v33 = vld [vmem:[#allocation3] sm:$0xff] }
 0x3b9   :  { %1478 = vst [vmem:[#allocation3 + $0x11] sm:$0xff] %v1473_v29  ;;  %v1469_v34 = vmax.f32 %v1464_v30, 0.0  ;;  %v1454_v35 = vadd.f32 %v1446_v32, %v1335_v52  ;;  %v3022_v36 = vpop.f32.mrb[49].mxu1  ;;  %3103 = vmatmul.mubr.f32.vlgmr.msra.gmra.mrb[50].mxu1 %v1481_v33  ;;  %3062 = vmatmul.mubr.f32.gmra.mrb[54].mxu0 %v1473_v29  ;;  %v3519_v52 = vpack.c.bf16 %v1723_v51, %v1722_v50 }
 0x3ba   :  { %3105 = vmatprep.mubr.msk.f32.mxu1 %vm3915_vm1, %v3914_v1  ;;  %3508 = vmatpush3.bf16.msra.mxu0 %v3507_v28 }
 0x3bb   :  { %v1474_v39 = vmul.f32 %v1469_v34, %v4419_v61  ;;  %v1465_v41 = vadd.f32 %v2318_v57, %v1454_v35  ;;  %3064 = vmatprep.mubr.msk.f32.mxu0 %vm3915_vm1, %v3914_v1  ;;  %3509 = vmatprep.subr.bf16.mxu0 %v3913_v0 }
 0x3bc   :  { %v1482_v48 = vld [vmem:[#allocation3 + $0x8] sm:$0xff] }
 0x3bd   :  { %1479 = vst [vmem:[#allocation3 + $0x19] sm:$0xff] %v1474_v39  ;;  %v1470_v53 = vmax.f32 %v1465_v41, 0.0  ;;  %3106 = vmatmul.mubr.f32.gmra.mrb[52].mxu1 %v1482_v48  ;;  %3065 = vmatmul.mubr.f32.gmra.mrb[56].mxu0 %v1474_v39  ;;  %v1704_v62 = vld [vmem:[#allocation3 + $0x2] sm:$0xff] }
 0x3be   :  { %3108 = vmatprep.mubr.msk.f32.mxu1 %vm3915_vm1, %v3914_v1  ;;  %3511 = vmatpush3.bf16.msra.mxu0 %v3510_v40 }
 0x3bf   :  { %v1475_v61 = vmul.f32 %v1470_v53, %v4433_v13  ;;  %3067 = vmatprep.mubr.msk.f32.mxu0 %vm3915_vm1, %v3914_v1  ;;  %3512 = vmatprep.subr.bf16.mxu0 %v3913_v0 }
 0x3c0   :  { %v1483_v47 = vld [vmem:[#allocation3 + $0x10] sm:$0xff] }
 0x3c1   :  { %1480 = vst [vmem:[#allocation3 + $0x21] sm:$0x3] %v1475_v61  ;;  %3109 = vmatmul.mubr.f32.gmra.mrb[54].mxu1 %v1483_v47  ;;  %v1705_v63 = vld [vmem:[#allocation3 + $0xa] sm:$0xff] }
 0x3c2   :  { %3111 = vmatprep.mubr.msk.f32.mxu1 %vm3915_vm1, %v3914_v1  ;;  %3514 = vmatpush3.bf16.msra.mxu0 %v3513_v44 }
 0x3c3   :  { %3515 = vmatprep.subr.bf16.mxu0 %v3913_v0 }
 0x3c4   :  { %v1484_v13 = vld [vmem:[#allocation3 + $0x18] sm:$0xff] }
 0x3c5   :  { %3112 = vmatmul.mubr.f32.gmra.mrb[56].mxu1 %v1484_v13  ;;  %v1706_v3 = vld [vmem:[#allocation3 + $0x12] sm:$0xff] }
 0x3c6   :  { %3114 = vmatprep.mubr.msk.f32.mxu1 %vm3915_vm1, %v3914_v1  ;;  %3517 = vmatpush3.bf16.msra.mxu0 %v3516_v49 }
 0x3c7   :  { %3518 = vmatprep.subr.bf16.mxu0 %v3913_v0 }
 0x3c8   :  { %v1506_v57 = vld [vmem:[#allocation3 + $0x21] sm:$0x3] }
 0x3c9   :  { %v1485_v59 = vld [vmem:[#allocation3 + $0x20] sm:$0x3]  ;;  %3068 = vmatmul.mubr.f32.gmra.mrb[58].mxu0 %v1506_v57 }
 0x3ca   :  { %3115 = vmatmul.mubr.f32.gmra.mrb[58].mxu1 %v1485_v59  ;;  %3520 = vmatpush3.bf16.msra.mxu0 %v3519_v52  ;;  %v1707_v5 = vld [vmem:[#allocation3 + $0x1a] sm:$0xff] }
 0x3cb   :  { %3149 = vmatprep.mubr.msk.f32.mxu0 %vm3915_vm1, %v3914_v1  ;;  %3521 = vmatprep.subr.bf16.mxu0 %v3913_v0  ;;  %v1708_v0 = vld [vmem:[#allocation3 + $0x22] sm:$0x3] }
 0x3cc   :  { %3174 = vmatprep.mubr.msk.f32.mxu1 %vm1854_vm3, %v1852_v58  ;;  %v2117_v58 = vld [vmem:[%s4829_s12 + $0x8] sm:$0xff] }
 0x3ce   :  { %3523 = vmatpush3.bf16.msra.mxu0 %v3522_v60 }
 0x3d1   :  { %3150 = vmatmul.mubr.f32.vlgmr.msra.gmra.mrb[60].mxu0 %v1704_v62 }
 0x3d2   :  { %3152 = vmatprep.mubr.msk.f32.mxu0 %vm3915_vm1, %v3914_v1 }
 0x3d5   :  { %3153 = vmatmul.mubr.f32.gmra.mrb[62].mxu0 %v1705_v63 }
 0x3d6   :  { %3155 = vmatprep.mubr.msk.f32.mxu0 %vm3915_vm1, %v3914_v1 }
 0x3d9   :  { %3156 = vmatmul.mubr.f32.gmra.mrb[64].mxu0 %v1706_v3  ;;  %v1841_v3 = vld [vmem:[#allocation4 + $0x21] sm:$0x3] }
 0x3da   :  { %3158 = vmatprep.mubr.msk.f32.mxu0 %vm3915_vm1, %v3914_v1 }
 0x3dd   :  { %3159 = vmatmul.mubr.f32.gmra.mrb[66].mxu0 %v1707_v5 }
 0x3de   :  { %3161 = vmatprep.mubr.msk.f32.mxu0 %vm3915_vm1, %v3914_v1 }
 0x3e1   :  { %3162 = vmatmul.mubr.f32.gmra.mrb[68].mxu0 %v1708_v0  ;;  %v2026_v0 = vld [vmem:[%s4828_s11 + $0x8] sm:$0xff] }
 0x3e2   :  { %3187 = vmatprep.mubr.msk.f32.mxu0 %vm1854_vm3, %v1940_v6  ;;  %v2027_v6 = vld [vmem:[%s4828_s11 + $0x10] sm:$0xff] }
 0x484   :  { %v1590_v2 = vpop.f32.mrb[50].mxu0 }
 0x485   :  { %v3057_v8 = vpop.f32.mrb[51].mxu0 }
 0x486   :  { %v2118_v8 = vld [vmem:[%s4829_s12 + $0x10] sm:$0xff] }
 0x488   :  { %v1595_v9 = vpop.f32.mrb[52].mxu0 }
 0x489   :  { %v3060_v4 = vpop.f32.mrb[53].mxu0 }
 0x48a   :  { %v1853_v4 = vld [vmem:[%s4830_s13 + $0x8] sm:$0xff] }
 0x48c   :  { %v1680_v10 = vpop.f32.mrb[50].mxu1  ;;  %v1600_v11 = vpop.f32.mrb[54].mxu0 }
 0x48d   :  { %v1681_v12 = vadd.f32 %v1680_v10, %v1590_v2  ;;  %v3104_v1 = vpop.f32.mrb[51].mxu1  ;;  %v3063_v14 = vpop.f32.mrb[55].mxu0  ;;  %v2028_v2 = vld [vmem:[%s4828_s11 + $0x18] sm:$0xff]  ;;  %v1941_v10 = vld [vmem:[#allocation19 + $0x8] sm:$0xff] }
 0x48e   :  { %v3544_v1 = vpack.c.bf16 %v2028_v2, %v2027_v6 }
 0x490   :  { %v1685_v15 = vpop.f32.mrb[52].mxu1  ;;  %v1605_v16 = vpop.f32.mrb[56].mxu0 }
 0x491   :  { %v1686_v17 = vadd.f32 %v1685_v15, %v1595_v9  ;;  %v3107_v18 = vpop.f32.mrb[53].mxu1  ;;  %v3066_v19 = vpop.f32.mrb[57].mxu0  ;;  %v2119_v9 = vld [vmem:[%s4829_s12 + $0x18] sm:$0xff]  ;;  %v2029_v15 = vld [vmem:[%s4828_s11 + $0x20] sm:$0xff] }
 0x492   :  { %v3576_v14 = vpack.c.bf16 %v2119_v9, %v2118_v8  ;;  %v2121_v18 = vld [vmem:[%s4829_s12 + $0x28] sm:$0xff] }
 0x494   :  { %v1690_v20 = vpop.f32.mrb[54].mxu1 }
 0x495   :  { %v1691_v23 = vadd.f32 %v1690_v20, %v1600_v11  ;;  %v3110_v21 = vpop.f32.mrb[55].mxu1 }
 0x496   :  { %v2032_v21 = vld [vmem:[%s4828_s11 + $0x38] sm:$0xff] }
 0x498   :  { %v1695_v22 = vpop.f32.mrb[56].mxu1 }
 0x499   :  { %v1696_v24 = vadd.f32 %v1695_v22, %v1605_v16  ;;  %v3113_v25 = vpop.f32.mrb[57].mxu1  ;;  %v2030_v16 = vld [vmem:[%s4828_s11 + $0x28] sm:$0xff]  ;;  %v2122_v22 = vld [vmem:[%s4829_s12 + $0x30] sm:$0xff] }
 0x49a   :  { %v3548_v19 = vpack.c.bf16 %v2030_v16, %v2029_v15 }
 0x49c   :  { %v1610_v27 = vpop.f32.mrb[58].mxu0 }
 0x49d   :  { %v1700_v28 = vpop.f32.mrb[58].mxu1  ;;  %v3069_v30 = vpop.f32.mrb[59].mxu0 }
 0x49e   :  { %v1701_v29 = vadd.f32 %v1700_v28, %v1610_v27  ;;  %v3116_v38 = vpop.f32.mrb[59].mxu1  ;;  %v2033_v28 = vld [vmem:[%s4828_s11 + $0x40] sm:$0xff] }
 0x49f   :  { %v2124_v30 = vld [vmem:[%s4829_s12 + $0x40] sm:$0xff]  ;;  %v2125_v38 = vld [vmem:[%s4829_s12 + $0x48] sm:$0xff] }
 0x4a4   :  { %v1792_v32 = vpop.f32.mrb[60].mxu0 }
 0x4a5   :  { %v1816_v33 = vadd.f32 %v1792_v32, %v1681_v12  ;;  %v3151_v34 = vpop.f32.mrb[61].mxu0  ;;  %v3588_v32 = vpack.c.bf16 %v2125_v38, %v2124_v30 }
 0x4a6   :  { %v2036_v34 = vld [vmem:[%s4828_s11 + $0x58] sm:$0xff] }
 0x4a7   :  { %v1827_v35 = vadd.f32 %v2319_v31, %v1816_v33  ;;  %v2035_v33 = vld [vmem:[%s4828_s11 + $0x50] sm:$0xff] }
 0x4a8   :  { %v1797_v36 = vpop.f32.mrb[62].mxu0 }
 0x4a9   :  { %v1832_v40 = vmax.f32 %v1827_v35, 0.0  ;;  %v1817_v39 = vadd.f32 %v1797_v36, %v1686_v17  ;;  %v3154_v41 = vpop.f32.mrb[63].mxu0  ;;  %v2120_v17 = vld [vmem:[%s4829_s12 + $0x20] sm:$0xff]  ;;  %v2126_v35 = vld [vmem:[%s4829_s12 + $0x50] sm:$0xff]  ;;  %v2127_v36 = vld [vmem:[%s4829_s12 + $0x58] sm:$0xff] }
 0x4aa   :  { %v3580_v20 = vpack.c.bf16 %v2121_v18, %v2120_v17  ;;  %v2037_v41 = vld [vmem:[%s4828_s11 + $0x60] sm:$0xff] }
 0x4ab   :  { %v1842_v37 = vadd.f32 %v1832_v40, %v4534_v26  ;;  %v1828_v42 = vadd.f32 %v2319_v31, %v1817_v39  ;;  %v3560_v40 = vpack.c.bf16 %v2036_v34, %v2035_v33  ;;  %v3592_v39 = vpack.c.bf16 %v2127_v36, %v2126_v35 }
 0x4ac   :  { %v1802_v48 = vpop.f32.mrb[64].mxu0 }
 0x4ad   :  { %1847 = vst [vmem:[#allocation21] sm:$0xff] %v1842_v37  ;;  %v1833_v53 = vmax.f32 %v1828_v42, 0.0  ;;  %v1818_v44 = vadd.f32 %v1802_v48, %v1691_v23  ;;  %v3157_v61 = vpop.f32.mrb[65].mxu0  ;;  %v2031_v23 = vld [vmem:[%s4828_s11 + $0x30] sm:$0xff]  ;;  %v2128_v42 = vld [vmem:[%s4829_s12 + $0x60] sm:$0xff]  ;;  %v2129_v48 = vld [vmem:[%s4829_s12 + $0x68] sm:$0xff] }
 0x4ae   :  { %v3552_v25 = vpack.c.bf16 %v2032_v21, %v2031_v23  ;;  %v2039_v61 = vld [vmem:[%s4828_s11 + $0x70] sm:$0xff] }
 0x4af   :  { %v1843_v45 = vadd.f32 %v1833_v53, %v4544_v43  ;;  %v1829_v46 = vadd.f32 %v2319_v31, %v1818_v44  ;;  %v3596_v44 = vpack.c.bf16 %v2129_v48, %v2128_v42 }
 0x4b0   :  { %v1807_v47 = vpop.f32.mrb[66].mxu0 }
 0x4b1   :  { %1848 = vst [vmem:[#allocation21 + $0x8] sm:$0xff] %v1843_v45  ;;  %v3524_v49 = vpack.c.bf16 %v1843_v45, %v1842_v37  ;;  %v1834_v50 = vmax.f32 %v1829_v46, 0.0  ;;  %v1819_v51 = vadd.f32 %v1807_v47, %v1696_v24  ;;  %v3160_v13 = vpop.f32.mrb[67].mxu0  ;;  %v2123_v24 = vld [vmem:[%s4829_s12 + $0x38] sm:$0xff]  ;;  %v2038_v37 = vld [vmem:[%s4828_s11 + $0x68] sm:$0xff]  ;;  %v2130_v46 = vld [vmem:[%s4829_s12 + $0x70] sm:$0xff] }
 0x4b2   :  { %v3584_v27 = vpack.c.bf16 %v2123_v24, %v2122_v22  ;;  %v3564_v53 = vpack.c.bf16 %v2038_v37, %v2037_v41  ;;  %v2040_v45 = vld [vmem:[%s4828_s11 + $0x78] sm:$0xff] }
 0x4b3   :  { %v1844_v52 = vadd.f32 %v1834_v50, %v4555_v55  ;;  %v1830_v54 = vadd.f32 %v2319_v31, %v1819_v51  ;;  %3525 = vmatprep.subr.bf16.mxu1 %v3524_v49  ;;  %3533 = vmatprep.subr.bf16.mxu0 %v3524_v49  ;;  %v2025_v55 = vld [vmem:[%s4828_s11] sm:$0xff]  ;;  %v3568_v47 = vpack.c.bf16 %v2040_v45, %v2039_v61 }
 0x4b4   :  { %v1812_v26 = vpop.f32.mrb[68].mxu0  ;;  %3527 = vmatpush3.bf16.msra.mxu1 %v3524_v49  ;;  %3535 = vmatpush3.bf16.msra.mxu0 %v3524_v49  ;;  %v3540_v11 = vpack.c.bf16 %v2026_v0, %v2025_v55  ;;  %v2131_v49 = vld [vmem:[%s4829_s12 + $0x78] sm:$0xff] }
 0x4b5   :  { %1849 = vst [vmem:[#allocation21 + $0xe] sm:$0xfc] %v1844_v52  ;;  %v1835_v56 = vmax.f32 %v1830_v54, 0.0  ;;  %v1820_v57 = vadd.f32 %v1812_v26, %v1701_v29  ;;  %v3163_v59 = vpop.f32.mrb[69].mxu0  ;;  %v2034_v29 = vld [vmem:[%s4828_s11 + $0x48] sm:$0xff]  ;;  %v3600_v50 = vpack.c.bf16 %v2131_v49, %v2130_v46  ;;  %s3917_s11 = smov [#allocation21]  }
 0x4b6   :  { %s2228_s8 = sshll.u32 %s3917_s11, 4  ;;  %s2229_s8 = int_to_ptr.vmem [resolvable:$true] %s2228_s8 }
 0x4b7   :  { %v1845_v43 = vadd.f32 %v1835_v56, %v4567_v7  ;;  %v1831_v60 = vadd.f32 %v2319_v31, %v1820_v57  ;;  %v2116_v7 = vld [vmem:[%s4829_s12] sm:$0xff]  ;;  %v3556_v31 = vpack.c.bf16 %v2034_v29, %v2033_v28  ;;  %s2216_s12 = sshll.u32 %s3918_s3, 4  ;;  %s3822_s0 = scalar_lea.vmem %s2229_s8, 512  ;;  %s2217_s12 = int_to_ptr.vmem [resolvable:$true] %s2216_s12 }
 0x4b8   :  { %v3572_v12 = vpack.c.bf16 %v2117_v58, %v2116_v7  ;;  %p3823_p2 = scmp.ne.s32.totalorder %s2229_s8, %s3822_s0  ;;  %p3827_p3 = scmp.lt.s32.totalorder %s2229_s8, %s2229_s8 }
 0x4b9   :  { %1850 = vst [vmem:[#allocation21 + $0x16] sm:$0xff] %v1845_v43  ;;  %v3528_v62 = vpack.c.bf16 %v1845_v43, %v1844_v52  ;;  %v1836_v63 = vmax.f32 %v1831_v60, 0.0  ;;  %p3828_p4 = scmp.lt.s32.totalorder %s3822_s0, %s3822_s0 }
 0x4bb   :  { %v1846_v5 = vadd.f32 %v1841_v3, %v1836_v63  ;;  %3529 = vmatprep.subr.bf16.mxu1 %v3528_v62  ;;  %3537 = vmatprep.subr.bf16.mxu0 %v3528_v62  ;;  %p3829_p5 = por %p3828_p4, %p3827_p3 }
 0x4bc   :  { %3531 = vmatpush3.bf16.msra.mxu1 %v3528_v62  ;;  %3539 = vmatpush3.bf16.msra.mxu0 %v3528_v62 }
 0x4bd   :  { %1851 = vst [vmem:[#allocation21 + $0x1e] sm:$0x3] %v1846_v5  ;;  %3172 = vmatprep.subr.msk.mxu1 %vm1861_vm4, %v1846_v5  ;;  %3185 = vmatprep.subr.msk.mxu0 %vm1861_vm4, %v1846_v5  ;;  %p3830_p6 = pnand %p3829_p5, %p3823_p2 }
 0x4c0   :  { %3173 = vmatpush3.msk.msra.mxu1 %vm1861_vm4, %v1846_v5  ;;  %3186 = vmatpush3.msk.msra.mxu0 %vm1861_vm4, %v1846_v5 }
 0x4c1   :  { %3175 = vmatmul.mubr.msk.f32.vlgmr.msra.gmra.mrb[60].mxu1 %vm1854_vm3, %v1853_v4  ;;  %3188 = vmatmul.mubr.msk.f32.vlgmr.msra.gmra.mrb[70].mxu0 %vm1854_vm3, %v1941_v10 }
 0x4c2   :  { %3541 = vmatprep.subr.bf16.mxu1 %v3540_v11  ;;  %3573 = vmatprep.subr.bf16.mxu0 %v3572_v12 }
 0x4c3   :  { %3543 = vmatpush3.bf16.msra.mxu1 %v3540_v11  ;;  %3575 = vmatpush3.bf16.msra.mxu0 %v3572_v12 }
 0x4c4   :  { %3545 = vmatprep.subr.bf16.mxu1 %v3544_v1  ;;  %3577 = vmatprep.subr.bf16.mxu0 %v3576_v14 }
 0x4c7   :  { %3547 = vmatpush3.bf16.msra.mxu1 %v3544_v1  ;;  %3579 = vmatpush3.bf16.msra.mxu0 %v3576_v14 }
 0x4c8   :  { %3549 = vmatprep.subr.bf16.mxu1 %v3548_v19  ;;  %3581 = vmatprep.subr.bf16.mxu0 %v3580_v20 }
 0x4cb   :  { %3551 = vmatpush3.bf16.msra.mxu1 %v3548_v19  ;;  %3583 = vmatpush3.bf16.msra.mxu0 %v3580_v20 }
 0x4cc   :  { %3553 = vmatprep.subr.bf16.mxu1 %v3552_v25  ;;  %3585 = vmatprep.subr.bf16.mxu0 %v3584_v27 }
 0x4cf   :  { %3555 = vmatpush3.bf16.msra.mxu1 %v3552_v25  ;;  %3587 = vmatpush3.bf16.msra.mxu0 %v3584_v27 }
 0x4d0   :  { %3557 = vmatprep.subr.bf16.mxu1 %v3556_v31  ;;  %3589 = vmatprep.subr.bf16.mxu0 %v3588_v32 }
 0x4d3   :  { %3559 = vmatpush3.bf16.msra.mxu1 %v3556_v31  ;;  %3591 = vmatpush3.bf16.msra.mxu0 %v3588_v32 }
 0x4d4   :  { %3561 = vmatprep.subr.bf16.mxu1 %v3560_v40  ;;  %3593 = vmatprep.subr.bf16.mxu0 %v3592_v39 }
 0x4d7   :  { %3563 = vmatpush3.bf16.msra.mxu1 %v3560_v40  ;;  %3595 = vmatpush3.bf16.msra.mxu0 %v3592_v39 }
 0x4d8   :  { %3565 = vmatprep.subr.bf16.mxu1 %v3564_v53  ;;  %3597 = vmatprep.subr.bf16.mxu0 %v3596_v44 }
 0x4db   :  { %3567 = vmatpush3.bf16.msra.mxu1 %v3564_v53  ;;  %3599 = vmatpush3.bf16.msra.mxu0 %v3596_v44 }
 0x4dc   :  { %3569 = vmatprep.subr.bf16.mxu1 %v3568_v47  ;;  %3601 = vmatprep.subr.bf16.mxu0 %v3600_v50 }
 0x4df   :  { %3571 = vmatpush3.bf16.msra.mxu1 %v3568_v47  ;;  %3603 = vmatpush3.bf16.msra.mxu0 %v3600_v50 }
 0x594   :  { %v3176_v51 = vpop.f32.mrb[60].mxu1  ;;  %v3189_v13 = vpop.f32.mrb[70].mxu0 }
 0x595   :  { %v2024_v52 = vmax.f32 %v3176_v51, %v3189_v13  ;;  %v1931_v54 = vpop.f32.mrb[61].mxu1  ;;  %v2014_v26 = vpop.f32.mrb[71].mxu0 }
 0x596   :  { %v2023_v56 = vmax.f32 %v1931_v54, %v2014_v26 }
 0x598   :  { %3222 = vmatprep.mubr.f32.mxu1 %v2023_v56  ;;  %3257 = vmatprep.mubr.f32.mxu0 %v2023_v56 }
 0x599   :  { %3223 = vmatmul.mubr.f32.vlgmr.msra.gmra.mrb[62].mxu1 %v2024_v52  ;;  %3258 = vmatmul.mubr.f32.vlgmr.msra.gmra.mrb[72].mxu0 %v2024_v52 }
 0x59a   :  { %3833 = shalt.err (!%p3830_p6)
}
 0x59b   :  { %s3834_s6 = scalar_lea.hbm %s4834_s17, 512 }
 0x59c   :  { %p3835_p7 = scmp.ne.s32.totalorder %s4834_s17, %s3834_s6  ;;  %p3838_p8 = scmp.lt.u32.totalorder %s3834_s6, %s4834_s17 }
 0x59e   :  { %p3840_p9 = pnand %p3838_p8, %p3835_p7 }
 0x5a0   :  { %3843 = shalt.err (!%p3840_p9)
}
 0x5a1   :  { %2234 = dma.vmem_to_hbm [thread:$0]  %s2229_s8, 512, %s4834_s17, [#allocation22], %s4845_s20, %s4845_s20, %s3905_s26  }
 0x5a2   :  { %s3844_s25 = scalar_lea.vmem %s2217_s12, 512  ;;  %p3849_p11 = scmp.lt.s32.totalorder %s2217_s12, %s2217_s12 }
 0x5a3   :  { %p3845_p10 = scmp.ne.s32.totalorder %s2217_s12, %s3844_s25  ;;  %p3850_p12 = scmp.lt.s32.totalorder %s3844_s25, %s3844_s25 }
 0x5a5   :  { %p3851_p13 = por %p3850_p12, %p3849_p11 }
 0x5a7   :  { %p3852_p0 = pnand %p3851_p13, %p3845_p10 }
 0x5a9   :  { %3855 = shalt.err (!%p3852_p0)
}
 0x5aa   :  { %s3856_s22 = scalar_lea.hbm %s4833_s16, 512 }
 0x5ab   :  { %p3857_p1 = scmp.ne.s32.totalorder %s4833_s16, %s3856_s22  ;;  %p3860_p2 = scmp.lt.u32.totalorder %s3856_s22, %s4833_s16 }
 0x5ad   :  { %p3862_p3 = pnand %p3860_p2, %p3857_p1 }
 0x5af   :  { %3865 = shalt.err (!%p3862_p3)
}
 0x5b0   :  { %2222 = dma.vmem_to_hbm [thread:$0]  %s2217_s12, 512, %s4833_s16, [#allocation7], %s4845_s20, %s4845_s20, %s3905_s26  }
 0x5b1   :  { %s3919_s14 = smov [#allocation23]  }
 0x5b2   :  { %s2240_s23 = sshll.u32 %s3919_s14, 4  ;;  %s2241_s23 = int_to_ptr.vmem [resolvable:$true] %s2240_s23 }
 0x5b3   :  { %s3866_s10 = scalar_lea.vmem %s2241_s23, 256  ;;  %p3871_p5 = scmp.lt.s32.totalorder %s2241_s23, %s2241_s23 }
 0x5b4   :  { %p3867_p4 = scmp.ne.s32.totalorder %s2241_s23, %s3866_s10  ;;  %p3872_p6 = scmp.lt.s32.totalorder %s3866_s10, %s3866_s10 }
 0x5b6   :  { %p3873_p7 = por %p3872_p6, %p3871_p5 }
 0x5b8   :  { %p3874_p8 = pnand %p3873_p7, %p3867_p4 }
 0x66c   :  { %v3224_v57 = vpop.f32.mrb[62].mxu1  ;;  %v3259_v59 = vpop.f32.mrb[72].mxu0 }
 0x66d   :  { %v2208_v43 = vmax.f32 %v3224_v57, %v3259_v59  ;;  %v2107_v60 = vpop.f32.mrb[63].mxu1  ;;  %v2198_v62 = vpop.f32.mrb[73].mxu0 }
 0x66e   :  { %v2207_v63 = vmax.f32 %v2107_v60, %v2198_v62 }
 0x66f   :  { %2210 = vst.msk [vmem:[#allocation23 + $0x8] sm:$0xff] %vm190_vm2, %v2208_v43 }
 0x670   :  { %2209 = vst.msk [vmem:[#allocation23] sm:$0xff] %vm190_vm2, %v2207_v63 }
 0x671   :  { %3877 = shalt.err (!%p3874_p8)
}
 0x672   :  { %s3878_s8 = scalar_lea.hbm %s4835_s18, 256 }
 0x673   :  { %p3879_p9 = scmp.ne.s32.totalorder %s4835_s18, %s3878_s8  ;;  %p3882_p10 = scmp.lt.u32.totalorder %s3878_s8, %s4835_s18 }
 0x675   :  { %p3884_p11 = pnand %p3882_p10, %p3879_p9 }
 0x677   :  { %3887 = shalt.err (!%p3884_p11)
}
 0x678   :  { %2246 = dma.vmem_to_hbm [thread:$0]  %s2241_s23, 256, %s4835_s18, [#allocation22], %s4845_s20, %s4845_s20, %s3905_s26  }
 0x679   :  { %3898 = dma.done.wait [#allocation7], 512  }
 0x67a   :  { %3899 = vsyncadd [#allocation7], 4294966784 }
 0x67b   :  { %3900 = dma.done.wait [#allocation22], 768  }
 0x67c   :  { %3901 = vsyncadd [#allocation22], 4294966528 }
 0x67d   :  { %2256 = vsyncpa [#allocation6], 1 }
 0x67e   :  { %2257 = vsyncpa [#allocation9], 1 }
 0x67f   :  { %2258 = vsyncpa [#allocation12], 1 }
 0x680   :  { %2259 = vsyncpa [#allocation15], 1 }
 0x681   :  { %2260 = vsyncpa [#allocation18], 1 }
 0x682   :  { %2261 = vsyncpa [#allocation7], 1 }
 0x683   :  { %2262 = vsyncpa [#allocation22], 1 }

</bundles_post_ra>
